<compile_context>
chip_gen: v7x
topology: tpu7x:2x2x1
jax: 0.10.0
libtpu: 0.0.40
codegen_flags: <defaults>
</compile_context>

<pallas_src>
import functools

import jax
import jax.numpy as jnp
from jax.experimental import pallas as pl
from jax.experimental.pallas import tpu as pltpu

BN_EPS = 1e-5


# ----------------------------------------------------------------------------
# Weight preprocessing (wrapper-side, tiny): fold the kw taps of the 3x3 conv
# into a block weight so one matmul per kh tap produces a full W*Cout-lane row.
#   Wblk[kh][p*Cin+ci, w*Cout+co] = W[kh, p-w+1, ci, co]  if 0 <= p-w+1 <= 2
# Pad columns (p=-1, p=W) only multiply zeros, so they are dropped: K = W*Cin.
# ----------------------------------------------------------------------------
def _make_block_weight(w_hwio, width, dtype):
    KH, KW, Cin, Cout = w_hwio.shape
    p = jnp.arange(width)[None, :, None]                 # input column
    w = jnp.arange(width)[None, None, :]                 # output column
    kw = jnp.arange(KW)[:, None, None]
    sel = (p == w + kw - 1).astype(w_hwio.dtype)         # (KW, W, W)
    blk = jnp.einsum('kpw,hkio->hpiwo', sel, w_hwio)     # (KH, W, Cin, W, Cout)
    return blk.reshape(KH, width * Cin, width * Cout).astype(dtype)


# Constant column-pool matrix: block-diagonal over the NB lane-packed images,
# each block maps (W*Cout) -> (Wh*Cout) summing adjacent column pairs * 0.25.
def _make_pool_matrix(width, cout, nb, dtype):
    w = jnp.arange(width)[:, None]
    wh = jnp.arange(width // 2)[None, :]
    col = (w // 2 == wh).astype(dtype)                               # (W, Wh)
    p = 0.25 * jnp.kron(col, jnp.eye(cout, dtype=dtype))             # (WC, WhC)
    return jnp.kron(jnp.eye(nb, dtype=dtype), p)                     # block-diag


# ----------------------------------------------------------------------------
# Shared conv body: stack NB images (with zero pad rows) into the scratch,
# 3 MXU matmuls over the whole stack, write per-image conv outputs and one
# (sum, sum-of-squares) statistics row for the whole grid step.
# ----------------------------------------------------------------------------
def _conv_body(get_src, w_ref, out_ref, st_ref, xp_ref, *, NB, H, W, Cin, Cout):
    Hp = H + 2
    WCin = W * Cin
    WCout = W * Cout
    zrow = jnp.zeros((1, WCin), xp_ref.dtype)
    for i in range(NB):                                  # static, NB is small
        base = i * Hp
        xp_ref[base:base + 1, :] = zrow                  # top pad row
        xp_ref[base + 1:base + 1 + H, :] = get_src(i).astype(xp_ref.dtype)
        xp_ref[base + H + 1:base + H + 2, :] = zrow      # bottom pad row

    M = NB * Hp - 2
    acc = jnp.zeros((M, WCout), jnp.float32)
    for kh in range(3):                                  # 3 matmuls, K = W*Cin
        acc = acc + jnp.dot(xp_ref[kh:kh + M, :], w_ref[kh],
                            preferred_element_type=jnp.float32)

    ssum = jnp.zeros((1, WCout), jnp.float32)
    ssq = jnp.zeros((1, WCout), jnp.float32)
    for i in range(NB):
        v = acc[i * Hp:i * Hp + H, :]                    # skip 2 boundary rows
        out_ref[i] = v.astype(out_ref.dtype)
        ssum = ssum + jnp.sum(v, axis=0, keepdims=True)
        ssq = ssq + jnp.sum(v * v, axis=0, keepdims=True)
    st_ref[0] = jnp.concatenate([ssum, ssq], axis=0)     # (2, W*Cout)


def _conv1_kernel(x_ref, w_ref, out_ref, st_ref, xp_ref,
                  *, NB, H, W, Cin, Cout):
    _conv_body(lambda i: x_ref[i], w_ref, out_ref, st_ref, xp_ref,
               NB=NB, H=H, W=W, Cin=Cin, Cout=Cout)


def _bn_relu_conv_kernel(x_ref, sb_ref, w_ref, out_ref, st_ref, xp_ref,
                         *, NB, H, W, Cin, Cout):
    # Fused BN1 + ReLU prologue (scale/bias from global batch stats), f32 VPU.
    scale = sb_ref[0:1, :]
    bias = sb_ref[1:2, :]

    def src(i):
        return jnp.maximum(x_ref[i].astype(jnp.float32) * scale + bias, 0.0)

    _conv_body(src, w_ref, out_ref, st_ref, xp_ref,
               NB=NB, H=H, W=W, Cin=Cin, Cout=Cout)


def _bn_relu_pool_kernel(x_ref, sb_ref, pool_ref, o_ref, *, NB, H, W, Cout):
    # Fused BN2 + ReLU + 2x2 average pool; NB images packed along lanes.
    Hh = H // 2
    WC = W * Cout
    yrs = []
    for i in range(NB):
        y = jnp.maximum(x_ref[i].astype(jnp.float32) * sb_ref[0:1, :]
                        + sb_ref[1:2, :], 0.0)            # (H, WC)
        y3 = y.reshape(Hh, 2, WC)
        yrs.append(y3[:, 0, :] + y3[:, 1, :])             # row pool -> (Hh, WC)
    yr = jnp.concatenate(yrs, axis=1) if NB > 1 else yrs[0]   # (Hh, NB*WC)
    # Column pool as a single MXU matmul; output is lane-dense (NB*Wh*Cout).
    o_ref[0] = jnp.dot(yr, pool_ref[...], preferred_element_type=jnp.float32)


# ----------------------------------------------------------------------------
# Wrapper-side BN finalize: reduce per-step (sum, sumsq) to per-channel
# scale/bias (biased variance, train-mode BN with gamma=1, beta=0).
# NOTE: single-pass E[x^2]-E[x]^2 in f32 is fine for normalized activations;
# switch to a mean-shifted two-pass if activations acquire large means.
# ----------------------------------------------------------------------------
def _channel_scale_bias(stats, count, width, cout):
    s = stats[:, 0, :].sum(axis=0).reshape(width, cout).sum(axis=0)
    sq = stats[:, 1, :].sum(axis=0).reshape(width, cout).sum(axis=0)
    mean = s / count
    var = sq / count - mean * mean
    scale = jax.lax.rsqrt(var + BN_EPS)
    bias = -mean * scale
    # Tile to the (W*Cout,) lane layout so kernels apply it elementwise.
    return jnp.stack([jnp.tile(scale, width), jnp.tile(bias, width)], axis=0)


def _pick_nb(N, H):
    # Target M ~= 128 rows per matmul; NB must divide N.
    target = max(1, 128 // (H + 2))
    nb = 1
    for cand in range(1, min(N, target) + 1):
        if N % cand == 0:
            nb = cand
    return nb


def conv_block(x_nchw, w1_oihw, w2_oihw, *, nb=None, use_bf16_matmul=False):
    """ConvBlock.forward.  Input/output NCHW; compute in lane-dense (.., W*C)."""
    N, Cin, H, W = x_nchw.shape
    Cout = w1_oihw.shape[0]
    assert H % 2 == 0 and W % 2 == 0
    if nb is None:
        nb = _pick_nb(N, H)
    assert N % nb == 0
    G = N // nb
    Hh, Wh = H // 2, W // 2
    WCin, WC = W * Cin, W * Cout

    cdt = jnp.bfloat16 if use_bf16_matmul else jnp.float32   # MXU operand dtype
    adt = jnp.bfloat16 if use_bf16_matmul else jnp.float32   # inter-stage acts

    x = jnp.transpose(x_nchw, (0, 2, 3, 1)).reshape(N, H, WCin)
    wb1 = _make_block_weight(jnp.transpose(w1_oihw, (2, 3, 1, 0)), W, cdt)
    wb2 = _make_block_weight(jnp.transpose(w2_oihw, (2, 3, 1, 0)), W, cdt)
    pool = _make_pool_matrix(W, Cout, nb, jnp.float32)

    cp = pltpu.CompilerParams(dimension_semantics=("parallel",))

    # --- stage 1: conv1 + per-step BN1 statistics -----------------------------
    conv1, st1 = pl.pallas_call(
        functools.partial(_conv1_kernel, NB=nb, H=H, W=W, Cin=Cin, Cout=Cout),
        grid=(G,),
        in_specs=[
            pl.BlockSpec((nb, H, WCin), lambda g: (g, 0, 0)),
            pl.BlockSpec((3, WCin, WC), lambda g: (0, 0, 0)),
        ],
        out_specs=[
            pl.BlockSpec((nb, H, WC), lambda g: (g, 0, 0)),
            pl.BlockSpec((1, 2, WC), lambda g: (g, 0, 0)),
        ],
        out_shape=[
            jax.ShapeDtypeStruct((N, H, WC), adt),
            jax.ShapeDtypeStruct((G, 2, WC), jnp.float32),
        ],
        scratch_shapes=[pltpu.VMEM((nb * (H + 2), WCin), cdt)],
        compiler_params=cp,
    )(x, wb1)
    sb1 = _channel_scale_bias(st1, N * H * W, W, Cout)

    # --- stage 2: BN1 + ReLU + conv2 + per-step BN2 statistics ----------------
    conv2, st2 = pl.pallas_call(
        functools.partial(_bn_relu_conv_kernel, NB=nb, H=H, W=W,
                          Cin=Cout, Cout=Cout),
        grid=(G,),
        in_specs=[
            pl.BlockSpec((nb, H, WC), lambda g: (g, 0, 0)),
            pl.BlockSpec((2, WC), lambda g: (0, 0)),
            pl.BlockSpec((3, WC, WC), lambda g: (0, 0, 0)),
        ],
        out_specs=[
            pl.BlockSpec((nb, H, WC), lambda g: (g, 0, 0)),
            pl.BlockSpec((1, 2, WC), lambda g: (g, 0, 0)),
        ],
        out_shape=[
            jax.ShapeDtypeStruct((N, H, WC), adt),
            jax.ShapeDtypeStruct((G, 2, WC), jnp.float32),
        ],
        scratch_shapes=[pltpu.VMEM((nb * (H + 2), WC), cdt)],
        compiler_params=cp,
    )(conv1, sb1, wb2)
    sb2 = _channel_scale_bias(st2, N * H * W, W, Cout)

    # --- stage 3: BN2 + ReLU + fused 2x2 average pool (matmul column pool) ----
    pooled = pl.pallas_call(
        functools.partial(_bn_relu_pool_kernel, NB=nb, H=H, W=W, Cout=Cout),
        grid=(G,),
        in_specs=[
            pl.BlockSpec((nb, H, WC), lambda g: (g, 0, 0)),
            pl.BlockSpec((2, WC), lambda g: (0, 0)),
            pl.BlockSpec((nb * WC, nb * Wh * Cout), lambda g: (0, 0)),
        ],
        out_specs=pl.BlockSpec((1, Hh, nb * Wh * Cout), lambda g: (g, 0, 0)),
        out_shape=jax.ShapeDtypeStruct((G, Hh, nb * Wh * Cout), jnp.float32),
        compiler_params=cp,
    )(conv2, sb2, pool)

    # Unpack lane-packed images and return NCHW.
    out = pooled.reshape(G, Hh, nb, Wh, Cout)
    out = jnp.transpose(out, (0, 2, 4, 1, 3)).reshape(N, Cout, Hh, Wh)
    return out


def _reference(x_nchw, w1, w2):
    def cbr(x, w):
        y = jax.lax.conv_general_dilated(
            x, w, window_strides=(1, 1), padding=((1, 1), (1, 1)),
            dimension_numbers=('NCHW', 'OIHW', 'NCHW'))
        mean = y.mean(axis=(0, 2, 3), keepdims=True)
        var = ((y - mean) ** 2).mean(axis=(0, 2, 3), keepdims=True)
        return jnp.maximum((y - mean) * jax.lax.rsqrt(var + BN_EPS), 0.0)
    y = cbr(x_nchw, w1)
    y = cbr(y, w2)
    N, C, H, W = y.shape
    return y.reshape(N, C, H // 2, 2, W // 2, 2).mean(axis=(3, 5))


if __name__ == "__main__":
    key = jax.random.PRNGKey(0)
    kx, k1, k2 = jax.random.split(key, 3)

    N, Cin, Cout, H, W = 2, 4, 8, 16, 16
    x = jax.random.normal(kx, (N, Cin, H, W), jnp.float32)

    # kaiming_normal_ (fan_in, gain=sqrt(2)) for 3x3 convs; no conv bias.
    std1 = (2.0 / (Cin * 9)) ** 0.5
    std2 = (2.0 / (Cout * 9)) ** 0.5
    w1 = std1 * jax.random.normal(k1, (Cout, Cin, 3, 3), jnp.float32)
    w2 = std2 * jax.random.normal(k2, (Cout, Cout, 3, 3), jnp.float32)

    ref = _reference(x, w1, w2)

    # Default (f32 MXU operands): tight parity with the f32 reference.
    out = jax.jit(conv_block)(x, w1, w2)
    out = jax.block_until_ready(out)
    assert out.shape == (N, Cout, H // 2, W // 2), out.shape
    assert bool(jnp.all(jnp.isfinite(out)))
    err = float(jnp.max(jnp.abs(out - ref)))
    assert err < 1e-3, err

    # bf16 MXU-operand path (v5e/v6e/v7x throughput option): looser parity.
    out_bf = jax.jit(functools.partial(conv_block, use_bf16_matmul=True))(x, w1, w2)
    out_bf = jax.block_until_ready(out_bf)
    assert bool(jnp.all(jnp.isfinite(out_bf)))
    err_bf = float(jnp.max(jnp.abs(out_bf - ref)))
    assert err_bf < 5e-2, err_bf

    print("KERNEL_OK")
</pallas_src>

<mosaic_0001>
module attributes {stable_mosaic.version = 11 : i64} {
  func.func @_conv1_kernel(%arg0: i32, %arg1: memref<2x16x64xf32, #tpu.memory_space<vmem>>, %arg2: memref<3x64x128xf32, #tpu.memory_space<vmem>>, %arg3: memref<2x16x128xf32, #tpu.memory_space<vmem>>, %arg4: memref<1x2x128xf32, #tpu.memory_space<vmem>>, %arg5: memref<36x64xf32, #tpu.memory_space<vmem>>) attributes {dimension_semantics = [#tpu.dimension_semantics<parallel>], iteration_bounds = array<i64: 1>, scalar_prefetch = 0 : i64, scratch_operands = 1 : i64, tpu.core_type = #tpu.core_type<tc>, window_params = [{transform_indices = @transform_0, window_bounds = array<i64: 2, 16, 64>}, {pipeline_mode = #tpu.pipeline_mode<synchronous>, transform_indices = @transform_1, window_bounds = array<i64: 3, 64, 128>}, {transform_indices = @transform_2, window_bounds = array<i64: 2, 16, 128>}, {transform_indices = @transform_3, window_bounds = array<i64: 1, 2, 128>}]} {
    %cst = arith.constant 0.000000e+00 : f32
    %0 = vector.broadcast %cst : f32 to vector<1x64xf32>
    %c0 = arith.constant 0 : index
    %c0_0 = arith.constant 0 : index
    %1 = vector.load %arg5[%c0, %c0_0] : memref<36x64xf32, #tpu.memory_space<vmem>>, vector<1x64xf32>
    tpu.vector_store %arg5[%c0, %c0_0], %0 {strides = array<i32>} : memref<36x64xf32, #tpu.memory_space<vmem>>, vector<1x64xf32>,
    %c0_1 = arith.constant 0 : index
    %c0_2 = arith.constant 0 : index
    %c0_3 = arith.constant 0 : index
    %2 = vector.load %arg1[%c0_1, %c0_2, %c0_3] : memref<2x16x64xf32, #tpu.memory_space<vmem>>, vector<1x16x64xf32>
    %3 = vector.shape_cast %2 : vector<1x16x64xf32> to vector<16x64xf32>
    %c1 = arith.constant 1 : index
    %c0_4 = arith.constant 0 : index
    %4 = vector.load %arg5[%c1, %c0_4] : memref<36x64xf32, #tpu.memory_space<vmem>>, vector<16x64xf32>
    tpu.vector_store %arg5[%c1, %c0_4], %3 {strides = array<i32>} : memref<36x64xf32, #tpu.memory_space<vmem>>, vector<16x64xf32>,
    %c17 = arith.constant 17 : index
    %c0_5 = arith.constant 0 : index
    %5 = vector.load %arg5[%c17, %c0_5] : memref<36x64xf32, #tpu.memory_space<vmem>>, vector<1x64xf32>
    tpu.vector_store %arg5[%c17, %c0_5], %0 {strides = array<i32>} : memref<36x64xf32, #tpu.memory_space<vmem>>, vector<1x64xf32>,
    %c18 = arith.constant 18 : index
    %c0_6 = arith.constant 0 : index
    %6 = vector.load %arg5[%c18, %c0_6] : memref<36x64xf32, #tpu.memory_space<vmem>>, vector<1x64xf32>
    tpu.vector_store %arg5[%c18, %c0_6], %0 {strides = array<i32>} : memref<36x64xf32, #tpu.memory_space<vmem>>, vector<1x64xf32>,
    %c1_7 = arith.constant 1 : index
    %c0_8 = arith.constant 0 : index
    %c0_9 = arith.constant 0 : index
    %7 = vector.load %arg1[%c1_7, %c0_8, %c0_9] : memref<2x16x64xf32, #tpu.memory_space<vmem>>, vector<1x16x64xf32>
    %8 = vector.shape_cast %7 : vector<1x16x64xf32> to vector<16x64xf32>
    %c19 = arith.constant 19 : index
    %c0_10 = arith.constant 0 : index
    %9 = vector.load %arg5[%c19, %c0_10] : memref<36x64xf32, #tpu.memory_space<vmem>>, vector<16x64xf32>
    tpu.vector_store %arg5[%c19, %c0_10], %8 {strides = array<i32>} : memref<36x64xf32, #tpu.memory_space<vmem>>, vector<16x64xf32>,
    %c35 = arith.constant 35 : index
    %c0_11 = arith.constant 0 : index
    %10 = vector.load %arg5[%c35, %c0_11] : memref<36x64xf32, #tpu.memory_space<vmem>>, vector<1x64xf32>
    tpu.vector_store %arg5[%c35, %c0_11], %0 {strides = array<i32>} : memref<36x64xf32, #tpu.memory_space<vmem>>, vector<1x64xf32>,
    %cst_12 = arith.constant 0.000000e+00 : f32
    %11 = vector.broadcast %cst_12 : f32 to vector<34x128xf32>
    %c0_13 = arith.constant 0 : index
    %c0_14 = arith.constant 0 : index
    %12 = vector.load %arg5[%c0_13, %c0_14] : memref<36x64xf32, #tpu.memory_space<vmem>>, vector<34x64xf32>
    %c0_15 = arith.constant 0 : index
    %c0_16 = arith.constant 0 : index
    %c0_17 = arith.constant 0 : index
    %13 = vector.load %arg2[%c0_15, %c0_16, %c0_17] : memref<3x64x128xf32, #tpu.memory_space<vmem>>, vector<1x64x128xf32>
    %14 = vector.shape_cast %13 : vector<1x64x128xf32> to vector<64x128xf32>
    %cst_18 = arith.constant dense<0.000000e+00> : vector<34x128xf32>
    %15 = tpu.matmul %12, %14, %cst_18 {dimension_numbers = #tpu.dot_dimension_numbers<[1], [0], [0], [1], [0, 0, 1, 1], [], []>} : vector<34x64xf32>, vector<64x128xf32>, vector<34x128xf32> -> vector<34x128xf32>
    %16 = arith.addf %11, %15 : vector<34x128xf32>
    %c1_19 = arith.constant 1 : index
    %c0_20 = arith.constant 0 : index
    %17 = vector.load %arg5[%c1_19, %c0_20] : memref<36x64xf32, #tpu.memory_space<vmem>>, vector<34x64xf32>
    %c1_21 = arith.constant 1 : index
    %c0_22 = arith.constant 0 : index
    %c0_23 = arith.constant 0 : index
    %18 = vector.load %arg2[%c1_21, %c0_22, %c0_23] : memref<3x64x128xf32, #tpu.memory_space<vmem>>, vector<1x64x128xf32>
    %19 = vector.shape_cast %18 : vector<1x64x128xf32> to vector<64x128xf32>
    %cst_24 = arith.constant dense<0.000000e+00> : vector<34x128xf32>
    %20 = tpu.matmul %17, %19, %cst_24 {dimension_numbers = #tpu.dot_dimension_numbers<[1], [0], [0], [1], [0, 0, 1, 1], [], []>} : vector<34x64xf32>, vector<64x128xf32>, vector<34x128xf32> -> vector<34x128xf32>
    %21 = arith.addf %16, %20 : vector<34x128xf32>
    %c2 = arith.constant 2 : index
    %c0_25 = arith.constant 0 : index
    %22 = vector.load %arg5[%c2, %c0_25] : memref<36x64xf32, #tpu.memory_space<vmem>>, vector<34x64xf32>
    %c2_26 = arith.constant 2 : index
    %c0_27 = arith.constant 0 : index
    %c0_28 = arith.constant 0 : index
    %23 = vector.load %arg2[%c2_26, %c0_27, %c0_28] : memref<3x64x128xf32, #tpu.memory_space<vmem>>, vector<1x64x128xf32>
    %24 = vector.shape_cast %23 : vector<1x64x128xf32> to vector<64x128xf32>
    %cst_29 = arith.constant dense<0.000000e+00> : vector<34x128xf32>
    %25 = tpu.matmul %22, %24, %cst_29 {dimension_numbers = #tpu.dot_dimension_numbers<[1], [0], [0], [1], [0, 0, 1, 1], [], []>} : vector<34x64xf32>, vector<64x128xf32>, vector<34x128xf32> -> vector<34x128xf32>
    %26 = arith.addf %21, %25 : vector<34x128xf32>
    %cst_30 = arith.constant 0.000000e+00 : f32
    %27 = vector.broadcast %cst_30 : f32 to vector<1x128xf32>
    %cst_31 = arith.constant 0.000000e+00 : f32
    %28 = vector.broadcast %cst_31 : f32 to vector<1x128xf32>
    %29 = vector.extract_strided_slice %26 {offsets = [0, 0], sizes = [16, 128], strides = [1, 1]} : vector<34x128xf32> to vector<16x128xf32>
    %c0_32 = arith.constant 0 : index
    %c0_33 = arith.constant 0 : index
    %c0_34 = arith.constant 0 : index
    %30 = vector.load %arg3[%c0_32, %c0_33, %c0_34] : memref<2x16x128xf32, #tpu.memory_space<vmem>>, vector<1x16x128xf32>
    %31 = vector.shape_cast %30 : vector<1x16x128xf32> to vector<16x128xf32>
    %32 = vector.shape_cast %29 : vector<16x128xf32> to vector<1x16x128xf32>
    tpu.vector_store %arg3[%c0_32, %c0_33, %c0_34], %32 {strides = array<i32>} : memref<2x16x128xf32, #tpu.memory_space<vmem>>, vector<1x16x128xf32>,
    %cst_35 = arith.constant dense<0.000000e+00> : vector<128xf32>
    %33 = vector.multi_reduction <add>, %29, %cst_35 [0] : vector<16x128xf32> to vector<128xf32>
    %34 = vector.shape_cast %33 : vector<128xf32> to vector<1x128xf32>
    %35 = arith.addf %27, %34 : vector<1x128xf32>
    %36 = arith.mulf %29, %29 : vector<16x128xf32>
    %cst_36 = arith.constant dense<0.000000e+00> : vector<128xf32>
    %37 = vector.multi_reduction <add>, %36, %cst_36 [0] : vector<16x128xf32> to vector<128xf32>
    %38 = vector.shape_cast %37 : vector<128xf32> to vector<1x128xf32>
    %39 = arith.addf %28, %38 : vector<1x128xf32>
    %40 = vector.extract_strided_slice %26 {offsets = [18, 0], sizes = [16, 128], strides = [1, 1]} : vector<34x128xf32> to vector<16x128xf32>
    %c1_37 = arith.constant 1 : index
    %c0_38 = arith.constant 0 : index
    %c0_39 = arith.constant 0 : index
    %41 = vector.load %arg3[%c1_37, %c0_38, %c0_39] : memref<2x16x128xf32, #tpu.memory_space<vmem>>, vector<1x16x128xf32>
    %42 = vector.shape_cast %41 : vector<1x16x128xf32> to vector<16x128xf32>
    %43 = vector.shape_cast %40 : vector<16x128xf32> to vector<1x16x128xf32>
    tpu.vector_store %arg3[%c1_37, %c0_38, %c0_39], %43 {strides = array<i32>} : memref<2x16x128xf32, #tpu.memory_space<vmem>>, vector<1x16x128xf32>,
    %cst_40 = arith.constant dense<0.000000e+00> : vector<128xf32>
    %44 = vector.multi_reduction <add>, %40, %cst_40 [0] : vector<16x128xf32> to vector<128xf32>
    %45 = vector.shape_cast %44 : vector<128xf32> to vector<1x128xf32>
    %46 = arith.addf %35, %45 : vector<1x128xf32>
    %47 = arith.mulf %40, %40 : vector<16x128xf32>
    %cst_41 = arith.constant dense<0.000000e+00> : vector<128xf32>
    %48 = vector.multi_reduction <add>, %47, %cst_41 [0] : vector<16x128xf32> to vector<128xf32>
    %49 = vector.shape_cast %48 : vector<128xf32> to vector<1x128xf32>
    %50 = arith.addf %39, %49 : vector<1x128xf32>
    %51 = tpu.concatenate %46, %50 in 0 : vector<1x128xf32>, vector<1x128xf32> -> vector<2x128xf32>
    %c0_42 = arith.constant 0 : index
    %c0_43 = arith.constant 0 : index
    %c0_44 = arith.constant 0 : index
    %52 = vector.load %arg4[%c0_42, %c0_43, %c0_44] : memref<1x2x128xf32, #tpu.memory_space<vmem>>, vector<1x2x128xf32>
    %53 = vector.shape_cast %52 : vector<1x2x128xf32> to vector<2x128xf32>
    %54 = vector.shape_cast %51 : vector<2x128xf32> to vector<1x2x128xf32>
    tpu.vector_store %arg4[%c0_42, %c0_43, %c0_44], %54 {strides = array<i32>} : memref<1x2x128xf32, #tpu.memory_space<vmem>>, vector<1x2x128xf32>,
    return
  }
  func.func @transform_0(%arg0: i32) -> (i32, i32, i32) {
    %c0_i32 = arith.constant 0 : i32
    %c0_i32_0 = arith.constant 0 : i32
    %c0_i32_1 = arith.constant 0 : i32
    return %arg0, %c0_i32, %c0_i32_0 : i32, i32, i32
  }
  func.func @transform_1(%arg0: i32) -> (i32, i32, i32) {
    %c0_i32 = arith.constant 0 : i32
    %c0_i32_0 = arith.constant 0 : i32
    %c0_i32_1 = arith.constant 0 : i32
    %c0_i32_2 = arith.constant 0 : i32
    return %c0_i32, %c0_i32_0, %c0_i32_1 : i32, i32, i32
  }
  func.func @transform_2(%arg0: i32) -> (i32, i32, i32) {
    %c0_i32 = arith.constant 0 : i32
    %c0_i32_0 = arith.constant 0 : i32
    %c0_i32_1 = arith.constant 0 : i32
    return %arg0, %c0_i32, %c0_i32_0 : i32, i32, i32
  }
  func.func @transform_3(%arg0: i32) -> (i32, i32, i32) {
    %c0_i32 = arith.constant 0 : i32
    %c0_i32_0 = arith.constant 0 : i32
    %c0_i32_1 = arith.constant 0 : i32
    return %arg0, %c0_i32, %c0_i32_0 : i32, i32, i32
  }
}

module attributes {stable_mosaic.version = 11 : i64} {
  func.func @_bn_relu_conv_kernel(%arg0: i32, %arg1: memref<2x16x128xf32, #tpu.memory_space<vmem>>, %arg2: memref<2x128xf32, #tpu.memory_space<vmem>>, %arg3: memref<3x128x128xf32, #tpu.memory_space<vmem>>, %arg4: memref<2x16x128xf32, #tpu.memory_space<vmem>>, %arg5: memref<1x2x128xf32, #tpu.memory_space<vmem>>, %arg6: memref<36x128xf32, #tpu.memory_space<vmem>>) attributes {dimension_semantics = [#tpu.dimension_semantics<parallel>], iteration_bounds = array<i64: 1>, scalar_prefetch = 0 : i64, scratch_operands = 1 : i64, tpu.core_type = #tpu.core_type<tc>, window_params = [{transform_indices = @transform_0, window_bounds = array<i64: 2, 16, 128>}, {pipeline_mode = #tpu.pipeline_mode<synchronous>, transform_indices = @transform_1, window_bounds = array<i64: 2, 128>}, {pipeline_mode = #tpu.pipeline_mode<synchronous>, transform_indices = @transform_2, window_bounds = array<i64: 3, 128, 128>}, {transform_indices = @transform_3, window_bounds = array<i64: 2, 16, 128>}, {transform_indices = @transform_4, window_bounds = array<i64: 1, 2, 128>}]} {
    %c0 = arith.constant 0 : index
    %c0_0 = arith.constant 0 : index
    %0 = vector.load %arg2[%c0, %c0_0] : memref<2x128xf32, #tpu.memory_space<vmem>>, vector<1x128xf32>
    %c1 = arith.constant 1 : index
    %c0_1 = arith.constant 0 : index
    %1 = vector.load %arg2[%c1, %c0_1] : memref<2x128xf32, #tpu.memory_space<vmem>>, vector<1x128xf32>
    %cst = arith.constant 0.000000e+00 : f32
    %2 = vector.broadcast %cst : f32 to vector<1x128xf32>
    %c0_2 = arith.constant 0 : index
    %c0_3 = arith.constant 0 : index
    %3 = vector.load %arg6[%c0_2, %c0_3] : memref<36x128xf32, #tpu.memory_space<vmem>>, vector<1x128xf32>
    tpu.vector_store %arg6[%c0_2, %c0_3], %2 {strides = array<i32>} : memref<36x128xf32, #tpu.memory_space<vmem>>, vector<1x128xf32>,
    %c0_4 = arith.constant 0 : index
    %c0_5 = arith.constant 0 : index
    %c0_6 = arith.constant 0 : index
    %4 = vector.load %arg1[%c0_4, %c0_5, %c0_6] : memref<2x16x128xf32, #tpu.memory_space<vmem>>, vector<1x16x128xf32>
    %5 = vector.shape_cast %4 : vector<1x16x128xf32> to vector<16x128xf32>
    %6 = vector.broadcast %0 : vector<1x128xf32> to vector<16x128xf32>
    %7 = arith.mulf %5, %6 : vector<16x128xf32>
    %8 = vector.broadcast %1 : vector<1x128xf32> to vector<16x128xf32>
    %9 = arith.addf %7, %8 : vector<16x128xf32>
    %cst_7 = arith.constant 0.000000e+00 : f32
    %10 = vector.broadcast %cst_7 : f32 to vector<16x128xf32>
    %11 = arith.maximumf %9, %10 : vector<16x128xf32>
    %c1_8 = arith.constant 1 : index
    %c0_9 = arith.constant 0 : index
    %12 = vector.load %arg6[%c1_8, %c0_9] : memref<36x128xf32, #tpu.memory_space<vmem>>, vector<16x128xf32>
    tpu.vector_store %arg6[%c1_8, %c0_9], %11 {strides = array<i32>} : memref<36x128xf32, #tpu.memory_space<vmem>>, vector<16x128xf32>,
    %c17 = arith.constant 17 : index
    %c0_10 = arith.constant 0 : index
    %13 = vector.load %arg6[%c17, %c0_10] : memref<36x128xf32, #tpu.memory_space<vmem>>, vector<1x128xf32>
    tpu.vector_store %arg6[%c17, %c0_10], %2 {strides = array<i32>} : memref<36x128xf32, #tpu.memory_space<vmem>>, vector<1x128xf32>,
    %c18 = arith.constant 18 : index
    %c0_11 = arith.constant 0 : index
    %14 = vector.load %arg6[%c18, %c0_11] : memref<36x128xf32, #tpu.memory_space<vmem>>, vector<1x128xf32>
    tpu.vector_store %arg6[%c18, %c0_11], %2 {strides = array<i32>} : memref<36x128xf32, #tpu.memory_space<vmem>>, vector<1x128xf32>,
    %c1_12 = arith.constant 1 : index
    %c0_13 = arith.constant 0 : index
    %c0_14 = arith.constant 0 : index
    %15 = vector.load %arg1[%c1_12, %c0_13, %c0_14] : memref<2x16x128xf32, #tpu.memory_space<vmem>>, vector<1x16x128xf32>
    %16 = vector.shape_cast %15 : vector<1x16x128xf32> to vector<16x128xf32>
    %17 = vector.broadcast %0 : vector<1x128xf32> to vector<16x128xf32>
    %18 = arith.mulf %16, %17 : vector<16x128xf32>
    %19 = vector.broadcast %1 : vector<1x128xf32> to vector<16x128xf32>
    %20 = arith.addf %18, %19 : vector<16x128xf32>
    %cst_15 = arith.constant 0.000000e+00 : f32
    %21 = vector.broadcast %cst_15 : f32 to vector<16x128xf32>
    %22 = arith.maximumf %20, %21 : vector<16x128xf32>
    %c19 = arith.constant 19 : index
    %c0_16 = arith.constant 0 : index
    %23 = vector.load %arg6[%c19, %c0_16] : memref<36x128xf32, #tpu.memory_space<vmem>>, vector<16x128xf32>
    tpu.vector_store %arg6[%c19, %c0_16], %22 {strides = array<i32>} : memref<36x128xf32, #tpu.memory_space<vmem>>, vector<16x128xf32>,
    %c35 = arith.constant 35 : index
    %c0_17 = arith.constant 0 : index
    %24 = vector.load %arg6[%c35, %c0_17] : memref<36x128xf32, #tpu.memory_space<vmem>>, vector<1x128xf32>
    tpu.vector_store %arg6[%c35, %c0_17], %2 {strides = array<i32>} : memref<36x128xf32, #tpu.memory_space<vmem>>, vector<1x128xf32>,
    %cst_18 = arith.constant 0.000000e+00 : f32
    %25 = vector.broadcast %cst_18 : f32 to vector<34x128xf32>
    %c0_19 = arith.constant 0 : index
    %c0_20 = arith.constant 0 : index
    %26 = vector.load %arg6[%c0_19, %c0_20] : memref<36x128xf32, #tpu.memory_space<vmem>>, vector<34x128xf32>
    %c0_21 = arith.constant 0 : index
    %c0_22 = arith.constant 0 : index
    %c0_23 = arith.constant 0 : index
    %27 = vector.load %arg3[%c0_21, %c0_22, %c0_23] : memref<3x128x128xf32, #tpu.memory_space<vmem>>, vector<1x128x128xf32>
    %28 = vector.shape_cast %27 : vector<1x128x128xf32> to vector<128x128xf32>
    %cst_24 = arith.constant dense<0.000000e+00> : vector<34x128xf32>
    %29 = tpu.matmul %26, %28, %cst_24 {dimension_numbers = #tpu.dot_dimension_numbers<[1], [0], [0], [1], [0, 0, 1, 1], [], []>} : vector<34x128xf32>, vector<128x128xf32>, vector<34x128xf32> -> vector<34x128xf32>
    %30 = arith.addf %25, %29 : vector<34x128xf32>
    %c1_25 = arith.constant 1 : index
    %c0_26 = arith.constant 0 : index
    %31 = vector.load %arg6[%c1_25, %c0_26] : memref<36x128xf32, #tpu.memory_space<vmem>>, vector<34x128xf32>
    %c1_27 = arith.constant 1 : index
    %c0_28 = arith.constant 0 : index
    %c0_29 = arith.constant 0 : index
    %32 = vector.load %arg3[%c1_27, %c0_28, %c0_29] : memref<3x128x128xf32, #tpu.memory_space<vmem>>, vector<1x128x128xf32>
    %33 = vector.shape_cast %32 : vector<1x128x128xf32> to vector<128x128xf32>
    %cst_30 = arith.constant dense<0.000000e+00> : vector<34x128xf32>
    %34 = tpu.matmul %31, %33, %cst_30 {dimension_numbers = #tpu.dot_dimension_numbers<[1], [0], [0], [1], [0, 0, 1, 1], [], []>} : vector<34x128xf32>, vector<128x128xf32>, vector<34x128xf32> -> vector<34x128xf32>
    %35 = arith.addf %30, %34 : vector<34x128xf32>
    %c2 = arith.constant 2 : index
    %c0_31 = arith.constant 0 : index
    %36 = vector.load %arg6[%c2, %c0_31] : memref<36x128xf32, #tpu.memory_space<vmem>>, vector<34x128xf32>
    %c2_32 = arith.constant 2 : index
    %c0_33 = arith.constant 0 : index
    %c0_34 = arith.constant 0 : index
    %37 = vector.load %arg3[%c2_32, %c0_33, %c0_34] : memref<3x128x128xf32, #tpu.memory_space<vmem>>, vector<1x128x128xf32>
    %38 = vector.shape_cast %37 : vector<1x128x128xf32> to vector<128x128xf32>
    %cst_35 = arith.constant dense<0.000000e+00> : vector<34x128xf32>
    %39 = tpu.matmul %36, %38, %cst_35 {dimension_numbers = #tpu.dot_dimension_numbers<[1], [0], [0], [1], [0, 0, 1, 1], [], []>} : vector<34x128xf32>, vector<128x128xf32>, vector<34x128xf32> -> vector<34x128xf32>
    %40 = arith.addf %35, %39 : vector<34x128xf32>
    %cst_36 = arith.constant 0.000000e+00 : f32
    %41 = vector.broadcast %cst_36 : f32 to vector<1x128xf32>
    %cst_37 = arith.constant 0.000000e+00 : f32
    %42 = vector.broadcast %cst_37 : f32 to vector<1x128xf32>
    %43 = vector.extract_strided_slice %40 {offsets = [0, 0], sizes = [16, 128], strides = [1, 1]} : vector<34x128xf32> to vector<16x128xf32>
    %c0_38 = arith.constant 0 : index
    %c0_39 = arith.constant 0 : index
    %c0_40 = arith.constant 0 : index
    %44 = vector.load %arg4[%c0_38, %c0_39, %c0_40] : memref<2x16x128xf32, #tpu.memory_space<vmem>>, vector<1x16x128xf32>
    %45 = vector.shape_cast %44 : vector<1x16x128xf32> to vector<16x128xf32>
    %46 = vector.shape_cast %43 : vector<16x128xf32> to vector<1x16x128xf32>
    tpu.vector_store %arg4[%c0_38, %c0_39, %c0_40], %46 {strides = array<i32>} : memref<2x16x128xf32, #tpu.memory_space<vmem>>, vector<1x16x128xf32>,
    %cst_41 = arith.constant dense<0.000000e+00> : vector<128xf32>
    %47 = vector.multi_reduction <add>, %43, %cst_41 [0] : vector<16x128xf32> to vector<128xf32>
    %48 = vector.shape_cast %47 : vector<128xf32> to vector<1x128xf32>
    %49 = arith.addf %41, %48 : vector<1x128xf32>
    %50 = arith.mulf %43, %43 : vector<16x128xf32>
    %cst_42 = arith.constant dense<0.000000e+00> : vector<128xf32>
    %51 = vector.multi_reduction <add>, %50, %cst_42 [0] : vector<16x128xf32> to vector<128xf32>
    %52 = vector.shape_cast %51 : vector<128xf32> to vector<1x128xf32>
    %53 = arith.addf %42, %52 : vector<1x128xf32>
    %54 = vector.extract_strided_slice %40 {offsets = [18, 0], sizes = [16, 128], strides = [1, 1]} : vector<34x128xf32> to vector<16x128xf32>
    %c1_43 = arith.constant 1 : index
    %c0_44 = arith.constant 0 : index
    %c0_45 = arith.constant 0 : index
    %55 = vector.load %arg4[%c1_43, %c0_44, %c0_45] : memref<2x16x128xf32, #tpu.memory_space<vmem>>, vector<1x16x128xf32>
    %56 = vector.shape_cast %55 : vector<1x16x128xf32> to vector<16x128xf32>
    %57 = vector.shape_cast %54 : vector<16x128xf32> to vector<1x16x128xf32>
    tpu.vector_store %arg4[%c1_43, %c0_44, %c0_45], %57 {strides = array<i32>} : memref<2x16x128xf32, #tpu.memory_space<vmem>>, vector<1x16x128xf32>,
    %cst_46 = arith.constant dense<0.000000e+00> : vector<128xf32>
    %58 = vector.multi_reduction <add>, %54, %cst_46 [0] : vector<16x128xf32> to vector<128xf32>
    %59 = vector.shape_cast %58 : vector<128xf32> to vector<1x128xf32>
    %60 = arith.addf %49, %59 : vector<1x128xf32>
    %61 = arith.mulf %54, %54 : vector<16x128xf32>
    %cst_47 = arith.constant dense<0.000000e+00> : vector<128xf32>
    %62 = vector.multi_reduction <add>, %61, %cst_47 [0] : vector<16x128xf32> to vector<128xf32>
    %63 = vector.shape_cast %62 : vector<128xf32> to vector<1x128xf32>
    %64 = arith.addf %53, %63 : vector<1x128xf32>
    %65 = tpu.concatenate %60, %64 in 0 : vector<1x128xf32>, vector<1x128xf32> -> vector<2x128xf32>
    %c0_48 = arith.constant 0 : index
    %c0_49 = arith.constant 0 : index
    %c0_50 = arith.constant 0 : index
    %66 = vector.load %arg5[%c0_48, %c0_49, %c0_50] : memref<1x2x128xf32, #tpu.memory_space<vmem>>, vector<1x2x128xf32>
    %67 = vector.shape_cast %66 : vector<1x2x128xf32> to vector<2x128xf32>
    %68 = vector.shape_cast %65 : vector<2x128xf32> to vector<1x2x128xf32>
    tpu.vector_store %arg5[%c0_48, %c0_49, %c0_50], %68 {strides = array<i32>} : memref<1x2x128xf32, #tpu.memory_space<vmem>>, vector<1x2x128xf32>,
    return
  }
  func.func @transform_0(%arg0: i32) -> (i32, i32, i32) {
    %c0_i32 = arith.constant 0 : i32
    %c0_i32_0 = arith.constant 0 : i32
    %c0_i32_1 = arith.constant 0 : i32
    return %arg0, %c0_i32, %c0_i32_0 : i32, i32, i32
  }
  func.func @transform_1(%arg0: i32) -> (i32, i32) {
    %c0_i32 = arith.constant 0 : i32
    %c0_i32_0 = arith.constant 0 : i32
    %c0_i32_1 = arith.constant 0 : i32
    return %c0_i32, %c0_i32_0 : i32, i32
  }
  func.func @transform_2(%arg0: i32) -> (i32, i32, i32) {
    %c0_i32 = arith.constant 0 : i32
    %c0_i32_0 = arith.constant 0 : i32
    %c0_i32_1 = arith.constant 0 : i32
    %c0_i32_2 = arith.constant 0 : i32
    return %c0_i32, %c0_i32_0, %c0_i32_1 : i32, i32, i32
  }
  func.func @transform_3(%arg0: i32) -> (i32, i32, i32) {
    %c0_i32 = arith.constant 0 : i32
    %c0_i32_0 = arith.constant 0 : i32
    %c0_i32_1 = arith.constant 0 : i32
    return %arg0, %c0_i32, %c0_i32_0 : i32, i32, i32
  }
  func.func @transform_4(%arg0: i32) -> (i32, i32, i32) {
    %c0_i32 = arith.constant 0 : i32
    %c0_i32_0 = arith.constant 0 : i32
    %c0_i32_1 = arith.constant 0 : i32
    return %arg0, %c0_i32, %c0_i32_0 : i32, i32, i32
  }
}

module attributes {stable_mosaic.version = 11 : i64} {
  func.func @_bn_relu_pool_kernel(%arg0: i32, %arg1: memref<2x16x128xf32, #tpu.memory_space<vmem>>, %arg2: memref<2x128xf32, #tpu.memory_space<vmem>>, %arg3: memref<256x128xf32, #tpu.memory_space<vmem>>, %arg4: memref<1x8x128xf32, #tpu.memory_space<vmem>>) attributes {dimension_semantics = [#tpu.dimension_semantics<parallel>], iteration_bounds = array<i64: 1>, scalar_prefetch = 0 : i64, scratch_operands = 0 : i64, tpu.core_type = #tpu.core_type<tc>, window_params = [{transform_indices = @transform_0, window_bounds = array<i64: 2, 16, 128>}, {pipeline_mode = #tpu.pipeline_mode<synchronous>, transform_indices = @transform_1, window_bounds = array<i64: 2, 128>}, {pipeline_mode = #tpu.pipeline_mode<synchronous>, transform_indices = @transform_2, window_bounds = array<i64: 256, 128>}, {transform_indices = @transform_3, window_bounds = array<i64: 1, 8, 128>}]} {
    %c0 = arith.constant 0 : index
    %c0_0 = arith.constant 0 : index
    %c0_1 = arith.constant 0 : index
    %0 = vector.load %arg1[%c0, %c0_0, %c0_1] : memref<2x16x128xf32, #tpu.memory_space<vmem>>, vector<1x16x128xf32>
    %1 = vector.shape_cast %0 : vector<1x16x128xf32> to vector<16x128xf32>
    %c0_2 = arith.constant 0 : index
    %c0_3 = arith.constant 0 : index
    %2 = vector.load %arg2[%c0_2, %c0_3] : memref<2x128xf32, #tpu.memory_space<vmem>>, vector<1x128xf32>
    %3 = vector.broadcast %2 : vector<1x128xf32> to vector<16x128xf32>
    %4 = arith.mulf %1, %3 : vector<16x128xf32>
    %c1 = arith.constant 1 : index
    %c0_4 = arith.constant 0 : index
    %5 = vector.load %arg2[%c1, %c0_4] : memref<2x128xf32, #tpu.memory_space<vmem>>, vector<1x128xf32>
    %6 = vector.broadcast %5 : vector<1x128xf32> to vector<16x128xf32>
    %7 = arith.addf %4, %6 : vector<16x128xf32>
    %cst = arith.constant 0.000000e+00 : f32
    %8 = vector.broadcast %cst : f32 to vector<16x128xf32>
    %9 = arith.maximumf %7, %8 : vector<16x128xf32>
    %10 = vector.shape_cast %9 : vector<16x128xf32> to vector<8x2x128xf32>
    %11 = vector.extract_strided_slice %10 {offsets = [0, 0, 0], sizes = [8, 1, 128], strides = [1, 1, 1]} : vector<8x2x128xf32> to vector<8x1x128xf32>
    %12 = vector.shape_cast %11 : vector<8x1x128xf32> to vector<8x128xf32>
    %13 = vector.extract_strided_slice %10 {offsets = [0, 1, 0], sizes = [8, 1, 128], strides = [1, 1, 1]} : vector<8x2x128xf32> to vector<8x1x128xf32>
    %14 = vector.shape_cast %13 : vector<8x1x128xf32> to vector<8x128xf32>
    %15 = arith.addf %12, %14 : vector<8x128xf32>
    %c1_5 = arith.constant 1 : index
    %c0_6 = arith.constant 0 : index
    %c0_7 = arith.constant 0 : index
    %16 = vector.load %arg1[%c1_5, %c0_6, %c0_7] : memref<2x16x128xf32, #tpu.memory_space<vmem>>, vector<1x16x128xf32>
    %17 = vector.shape_cast %16 : vector<1x16x128xf32> to vector<16x128xf32>
    %c0_8 = arith.constant 0 : index
    %c0_9 = arith.constant 0 : index
    %18 = vector.load %arg2[%c0_8, %c0_9] : memref<2x128xf32, #tpu.memory_space<vmem>>, vector<1x128xf32>
    %19 = vector.broadcast %18 : vector<1x128xf32> to vector<16x128xf32>
    %20 = arith.mulf %17, %19 : vector<16x128xf32>
    %c1_10 = arith.constant 1 : index
    %c0_11 = arith.constant 0 : index
    %21 = vector.load %arg2[%c1_10, %c0_11] : memref<2x128xf32, #tpu.memory_space<vmem>>, vector<1x128xf32>
    %22 = vector.broadcast %21 : vector<1x128xf32> to vector<16x128xf32>
    %23 = arith.addf %20, %22 : vector<16x128xf32>
    %cst_12 = arith.constant 0.000000e+00 : f32
    %24 = vector.broadcast %cst_12 : f32 to vector<16x128xf32>
    %25 = arith.maximumf %23, %24 : vector<16x128xf32>
    %26 = vector.shape_cast %25 : vector<16x128xf32> to vector<8x2x128xf32>
    %27 = vector.extract_strided_slice %26 {offsets = [0, 0, 0], sizes = [8, 1, 128], strides = [1, 1, 1]} : vector<8x2x128xf32> to vector<8x1x128xf32>
    %28 = vector.shape_cast %27 : vector<8x1x128xf32> to vector<8x128xf32>
    %29 = vector.extract_strided_slice %26 {offsets = [0, 1, 0], sizes = [8, 1, 128], strides = [1, 1, 1]} : vector<8x2x128xf32> to vector<8x1x128xf32>
    %30 = vector.shape_cast %29 : vector<8x1x128xf32> to vector<8x128xf32>
    %31 = arith.addf %28, %30 : vector<8x128xf32>
    %32 = tpu.concatenate %15, %31 in 1 : vector<8x128xf32>, vector<8x128xf32> -> vector<8x256xf32>
    %c0_13 = arith.constant 0 : index
    %c0_14 = arith.constant 0 : index
    %33 = vector.load %arg3[%c0_13, %c0_14] : memref<256x128xf32, #tpu.memory_space<vmem>>, vector<256x128xf32>
    %cst_15 = arith.constant dense<0.000000e+00> : vector<8x128xf32>
    %34 = tpu.matmul %32, %33, %cst_15 {dimension_numbers = #tpu.dot_dimension_numbers<[1], [0], [0], [1], [0, 0, 1, 1], [], []>} : vector<8x256xf32>, vector<256x128xf32>, vector<8x128xf32> -> vector<8x128xf32>
    %c0_16 = arith.constant 0 : index
    %c0_17 = arith.constant 0 : index
    %c0_18 = arith.constant 0 : index
    %35 = vector.load %arg4[%c0_16, %c0_17, %c0_18] : memref<1x8x128xf32, #tpu.memory_space<vmem>>, vector<1x8x128xf32>
    %36 = vector.shape_cast %35 : vector<1x8x128xf32> to vector<8x128xf32>
    %37 = vector.shape_cast %34 : vector<8x128xf32> to vector<1x8x128xf32>
    tpu.vector_store %arg4[%c0_16, %c0_17, %c0_18], %37 {strides = array<i32>} : memref<1x8x128xf32, #tpu.memory_space<vmem>>, vector<1x8x128xf32>,
    return
  }
  func.func @transform_0(%arg0: i32) -> (i32, i32, i32) {
    %c0_i32 = arith.constant 0 : i32
    %c0_i32_0 = arith.constant 0 : i32
    %c0_i32_1 = arith.constant 0 : i32
    return %arg0, %c0_i32, %c0_i32_0 : i32, i32, i32
  }
  func.func @transform_1(%arg0: i32) -> (i32, i32) {
    %c0_i32 = arith.constant 0 : i32
    %c0_i32_0 = arith.constant 0 : i32
    %c0_i32_1 = arith.constant 0 : i32
    return %c0_i32, %c0_i32_0 : i32, i32
  }
  func.func @transform_2(%arg0: i32) -> (i32, i32) {
    %c0_i32 = arith.constant 0 : i32
    %c0_i32_0 = arith.constant 0 : i32
    %c0_i32_1 = arith.constant 0 : i32
    return %c0_i32, %c0_i32_0 : i32, i32
  }
  func.func @transform_3(%arg0: i32) -> (i32, i32, i32) {
    %c0_i32 = arith.constant 0 : i32
    %c0_i32_0 = arith.constant 0 : i32
    %c0_i32_1 = arith.constant 0 : i32
    return %arg0, %c0_i32, %c0_i32_0 : i32, i32, i32
  }
}

</mosaic_0001>

<bundles_post_ra>
// kernel: tile.23
= control target key start
LH: loop header
LB: loop body
LE: loop exit
PB: predicated region body
PF: predicated region fallthrough
CT: control target
= control target key end

     0   :  { %s28_s0 = inlined_call_operand.vmem [shape: f32[8], index: 0, kind: input, shape index: {}]   ;;  %s29_s1 = inlined_call_operand.vmem [shape: f32[16,8], index: 1, kind: output, shape index: {}]  }
   0x1   :  { %v4_v0 = vld [vmem:[%s28_s0] ss:$0 sm:$0xff] }
   0x2   :  { %5 = vst [vmem:[%s29_s1] sm:$0xff] %v4_v0  ;;  %8 = vst [vmem:[%s29_s1 + $0x8] sm:$0xff] %v4_v0 }

// kernel: tile.28
= control target key start
LH: loop header
LB: loop body
LE: loop exit
PB: predicated region body
PF: predicated region fallthrough
CT: control target
= control target key end

     0   :  { %s131_s10 = smov 120   ;;  %s132_s11 = smov 104   ;;  %vm3_vm0 = vcmask 64512   ;;  %vm9_vm1 = vcmask 1048512   ;;  %vm15_vm2 = vcmask 982912   ;;  %vm21_vm3 = vcmask 917312   ;;  %s207_s0 = inlined_call_operand.vmem [shape: f32[16,8], index: 0, kind: input, shape index: {}]   ;;  %s208_s1 = inlined_call_operand.vmem [shape: f32[1,128], index: 1, kind: output, shape index: {}]  }
   0x1   :  { %v101_v0 = vld [vmem:[%s207_s0 + $0xf] sm:$0x1]   ;;  %v103_v1 = vld [vmem:[%s207_s0 + $0xd] sm:$0x1]   ;;  %v102_v2 = vld [vmem:[%s207_s0 + $0xe] sm:$0x1]  }
   0x2   :  { %7 = vrot.lane.b32.xlu0 %v101_v0, %s131_s10  ;;  %19 = vrot.lane.b32.xlu1 %v103_v1, %s132_s11  ;;  %v104_v3 = vld [vmem:[%s207_s0 + $0xc] sm:$0x1]   ;;  %s133_s16 = smov 112   ;;  %s134_s17 = smov 96   ;;  %v105_v4 = vld [vmem:[%s207_s0 + $0xb] sm:$0x1]  }
   0x3   :  { %v106_v5 = vld [vmem:[%s207_s0 + $0xa] sm:$0x1]   ;;  %v2_v6 = vld [vmem:[%s207_s0] sm:$0x1]   ;;  %s135_s24 = smov 88   ;;  %s136_s25 = smov 80  }
   0x4   :  { %4 = vst.msk [vmem:[#allocation0] sm:$0x1] %vm3_vm0, %v2_v6   ;;  %v107_v7 = vld [vmem:[%s207_s0 + $0x9] sm:$0x1]   ;;  %v108_v8 = vld [vmem:[%s207_s0 + $0x8] sm:$0x1]  }
   0x5   :  { %s137_s30 = smov 72   ;;  %s138_s2 = smov 64   ;;  %v109_v9 = vld [vmem:[%s207_s0 + $0x7] sm:$0x1]   ;;  %v110_v10 = vld [vmem:[%s207_s0 + $0x6] sm:$0x1]  }
   0x6   :  { %13 = vrot.lane.b32.xlu0 %v102_v2, %s133_s16  ;;  %25 = vrot.lane.b32.xlu1 %v104_v3, %s134_s17  ;;  %s139_s7 = smov 56   ;;  %s140_s8 = smov 48   ;;  %v111_v11 = vld [vmem:[%s207_s0 + $0x5] sm:$0x1]   ;;  %v112_v12 = vld [vmem:[%s207_s0 + $0x4] sm:$0x1]  }
   0x7   :  { %s141_s13 = smov 40   ;;  %s142_s14 = smov 32   ;;  %v113_v13 = vld [vmem:[%s207_s0 + $0x3] sm:$0x1]   ;;  %v114_v14 = vld [vmem:[%s207_s0 + $0x2] sm:$0x1]  }
   0x8   :  { %s143_s19 = smov 24   ;;  %s144_s20 = smov 16   ;;  %v115_v15 = vld [vmem:[%s207_s0 + $0x1] sm:$0x1]   ;;  %vm27_vm4 = vcmask 851712   ;;  %vm33_vm5 = vcmask 786112  }
   0x9   :  { %s145_s0 = smov 8   ;;  %vm39_vm6 = vcmask 720512   ;;  %vm45_vm7 = vcmask 654912   ;;  %vm51_vm8 = vcmask 589312   ;;  %vm57_vm9 = vcmask 523712  }
   0xa   :  { %31 = vrot.lane.b32.xlu0 %v105_v4, %s135_s24  ;;  %37 = vrot.lane.b32.xlu1 %v106_v5, %s136_s25  ;;  %vm63_vm10 = vcmask 458112   ;;  %vm69_vm11 = vcmask 392512   ;;  %vm75_vm12 = vcmask 326912   ;;  %vm81_vm13 = vcmask 261312  }
   0xb   :  { %vm87_vm14 = vcmask 195712   ;;  %vm93_vm15 = vcmask 130112  }
   0xe   :  { %43 = vrot.lane.b32.xlu0 %v107_v7, %s137_s30  ;;  %49 = vrot.lane.b32.xlu1 %v108_v8, %s138_s2 }
  0x12   :  { %55 = vrot.lane.b32.xlu0 %v109_v9, %s139_s7  ;;  %61 = vrot.lane.b32.xlu1 %v110_v10, %s140_s8 }
  0x16   :  { %67 = vrot.lane.b32.xlu0 %v111_v11, %s141_s13  ;;  %73 = vrot.lane.b32.xlu1 %v112_v12, %s142_s14 }
  0x1a   :  { %79 = vrot.lane.b32.xlu0 %v113_v13, %s143_s19  ;;  %85 = vrot.lane.b32.xlu1 %v114_v14, %s144_s20 }
  0x1e   :  { %91 = vrot.lane.b32.xlu0 %v115_v15, %s145_s0 }
  0x74   :  { %v8_v16 = vpop.permute.xlu0 %7   ;;  %v20_v17 = vpop.permute.xlu1 %19  }
  0x75   :  { %10 = vst.msk [vmem:[#allocation0] sm:$0x1] %vm9_vm1, %v8_v16  }
  0x78   :  { %v14_v18 = vpop.permute.xlu0 %13   ;;  %v26_v19 = vpop.permute.xlu1 %25  }
  0x79   :  { %16 = vst.msk [vmem:[#allocation0] sm:$0x1] %vm15_vm2, %v14_v18  }
  0x7a   :  { %22 = vst.msk [vmem:[#allocation0] sm:$0x1] %vm21_vm3, %v20_v17  }
  0x7b   :  { %28 = vst.msk [vmem:[#allocation0] sm:$0x1] %vm27_vm4, %v26_v19  }
  0x7c   :  { %v32_v20 = vpop.permute.xlu0 %31   ;;  %v38_v21 = vpop.permute.xlu1 %37  }
  0x7d   :  { %34 = vst.msk [vmem:[#allocation0] sm:$0x1] %vm33_vm5, %v32_v20  }
  0x7e   :  { %40 = vst.msk [vmem:[#allocation0] sm:$0x1] %vm39_vm6, %v38_v21  }
  0x80   :  { %v44_v22 = vpop.permute.xlu0 %43   ;;  %v50_v23 = vpop.permute.xlu1 %49  }
  0x81   :  { %46 = vst.msk [vmem:[#allocation0] sm:$0x1] %vm45_vm7, %v44_v22  }
  0x82   :  { %52 = vst.msk [vmem:[#allocation0] sm:$0x1] %vm51_vm8, %v50_v23  }
  0x84   :  { %v56_v24 = vpop.permute.xlu0 %55   ;;  %v62_v25 = vpop.permute.xlu1 %61  }
  0x85   :  { %58 = vst.msk [vmem:[#allocation0] sm:$0x1] %vm57_vm9, %v56_v24  }
  0x86   :  { %64 = vst.msk [vmem:[#allocation0] sm:$0x1] %vm63_vm10, %v62_v25  }
  0x88   :  { %v68_v26 = vpop.permute.xlu0 %67   ;;  %v74_v27 = vpop.permute.xlu1 %73  }
  0x89   :  { %70 = vst.msk [vmem:[#allocation0] sm:$0x1] %vm69_vm11, %v68_v26  }
  0x8a   :  { %76 = vst.msk [vmem:[#allocation0] sm:$0x1] %vm75_vm12, %v74_v27  }
  0x8c   :  { %v80_v28 = vpop.permute.xlu0 %79   ;;  %v86_v29 = vpop.permute.xlu1 %85  }
  0x8d   :  { %82 = vst.msk [vmem:[#allocation0] sm:$0x1] %vm81_vm13, %v80_v28  }
  0x8e   :  { %88 = vst.msk [vmem:[#allocation0] sm:$0x1] %vm87_vm14, %v86_v29  }
  0x90   :  { %v92_v30 = vpop.permute.xlu0 %91  }
  0x91   :  { %94 = vst.msk [vmem:[#allocation0] sm:$0x1] %vm93_vm15, %v92_v30  }
  0x98   :  { %v98_v31 = vld [vmem:[#allocation0] sm:$0x1] }
  0x99   :  { %100 = vst [vmem:[%s208_s1] sm:$0x1] %v98_v31 }

// kernel: conv_block.3
= control target key start
LH: loop header
LB: loop body
LE: loop exit
PB: predicated region body
PF: predicated region fallthrough
CT: control target
= control target key end

     0   :  { %v692_v0 = vmov 0.0|0.0   ;;  %vm13_vm0 = vcmask 516096   ;;  %vm693_vm1 = vmmov 0   ;;  %v694_v8 = vmov 0.0   ;;  %s890_s1 = inlined_call_operand.vmem [shape: f32[3,64,128], index: 1, kind: input, shape index: {}]   ;;  %s891_s0 = inlined_call_operand.vmem [shape: f32[2,16,64], index: 0, kind: input, shape index: {}]   ;;  %s892_s2 = inlined_call_operand.vmem [shape: f32[2,16,128], index: 2, kind: output, shape index: {0}]   ;;  %s893_s3 = inlined_call_operand.vmem [shape: f32[1,2,128], index: 3, kind: output, shape index: {1}]  }
   0x1   :  { %632 = vmatprep.subr.bf16.mxu1 %v692_v0  ;;  %644 = vmatprep.subr.bf16.mxu0 %v692_v0  ;;  %v466_v1 = vld [vmem:[%s890_s1 + $0x40] sm:$0xff]  ;;  %v467_v2 = vld [vmem:[%s890_s1 + $0x48] sm:$0xff]  ;;  %v468_v6 = vld [vmem:[%s890_s1 + $0x50] sm:$0xff]  ;;  %14 = vst.msk [vmem:[#allocation2] sm:$0x1] %vm13_vm0, %v694_v8  ;;  %vm17_vm2 = vcmask 523264  }
   0x2   :  { %v33_v3 = vld [vmem:[%s890_s1] sm:$0xff]  ;;  %v633_v4 = vpack.c.bf16 %v467_v2, %v466_v1  ;;  %v34_v5 = vld [vmem:[%s890_s1 + $0x8] sm:$0xff]  ;;  %v469_v7 = vld [vmem:[%s890_s1 + $0x58] sm:$0xff]  ;;  %555 = vmatprep.mubr.msk.f32.mxu1 %vm693_vm1, %v694_v8  ;;  %586 = vmatprep.mubr.msk.f32.mxu0 %vm693_vm1, %v694_v8  ;;  %20 = vst.msk [vmem:[#allocation2 + $0x11] sm:$0x1] %vm13_vm0, %v694_v8  ;;  %vm416_vm3 = vcmask 1045504  }
   0x3   :  { %21 = vst.msk [vmem:[#allocation2 + $0x12] sm:$0x1] %vm13_vm0, %v694_v8  ;;  %27 = vst.msk [vmem:[#allocation2 + $0x23] sm:$0x1] %vm13_vm0, %v694_v8  ;;  %v645_v9 = vpack.c.bf16 %v34_v5, %v33_v3  ;;  %v35_v10 = vld [vmem:[%s890_s1 + $0x10] sm:$0xff]  ;;  %v36_v11 = vld [vmem:[%s890_s1 + $0x18] sm:$0xff]  ;;  %v636_v12 = vpack.c.bf16 %v469_v7, %v468_v6 }
   0x4   :  { %634 = vmatpush3.bf16.msra.mxu1 %v633_v4  ;;  %v648_v13 = vpack.c.bf16 %v36_v11, %v35_v10  ;;  %v470_v14 = vld [vmem:[%s890_s1 + $0x60] sm:$0xff]  ;;  %v471_v15 = vld [vmem:[%s890_s1 + $0x68] sm:$0xff]  ;;  %v464_v21 = vld [vmem:[%s891_s0 + $0x10] sm:$0xff]  ;;  %vm453_vm4 = vcmask 1040384  }
   0x5   :  { %646 = vmatpush3.bf16.msra.mxu0 %v645_v9  ;;  %635 = vmatprep.subr.bf16.mxu1 %v692_v0  ;;  %v37_v16 = vld [vmem:[%s890_s1 + $0x20] sm:$0xff]  ;;  %v38_v17 = vld [vmem:[%s890_s1 + $0x28] sm:$0xff]  ;;  %v639_v20 = vpack.c.bf16 %v471_v15, %v470_v14  ;;  %v472_v23 = vld [vmem:[%s890_s1 + $0x70] sm:$0xff]  ;;  %25 = vst.msk [vmem:[#allocation2 + $0x13] sm:$0xff] %vm17_vm2, %v464_v21 }
   0x6   :  { %647 = vmatprep.subr.bf16.mxu0 %v692_v0  ;;  %v15_v18 = vld [vmem:[%s891_s0] sm:$0xff]  ;;  %v16_v19 = vld [vmem:[%s891_s0 + $0x8] sm:$0xff]  ;;  %v651_v22 = vpack.c.bf16 %v38_v17, %v37_v16  ;;  %v473_v24 = vld [vmem:[%s890_s1 + $0x78] sm:$0xff] }
   0x7   :  { %18 = vst.msk [vmem:[#allocation2 + $0x1] sm:$0xff] %vm17_vm2, %v15_v18  ;;  %19 = vst.msk [vmem:[#allocation2 + $0x9] sm:$0xff] %vm17_vm2, %v16_v19  ;;  %v465_v25 = vld [vmem:[%s891_s0 + $0x18] sm:$0xff]  ;;  %v39_v26 = vld [vmem:[%s890_s1 + $0x30] sm:$0xff]  ;;  %v642_v28 = vpack.c.bf16 %v473_v24, %v472_v23 }
   0x8   :  { %637 = vmatpush3.bf16.msra.mxu1 %v636_v12  ;;  %v40_v27 = vld [vmem:[%s890_s1 + $0x38] sm:$0xff]  ;;  %26 = vst.msk [vmem:[#allocation2 + $0x1b] sm:$0xff] %vm17_vm2, %v465_v25  ;;  %v484_v30 = vld [vmem:[%s890_s1 + $0x80] sm:$0xff]  ;;  %v485_v31 = vld [vmem:[%s890_s1 + $0x88] sm:$0xff] }
   0x9   :  { %649 = vmatpush3.bf16.msra.mxu0 %v648_v13  ;;  %638 = vmatprep.subr.bf16.mxu1 %v692_v0  ;;  %v654_v29 = vpack.c.bf16 %v40_v27, %v39_v26  ;;  %v657_v34 = vpack.c.bf16 %v485_v31, %v484_v30  ;;  %v486_v35 = vld [vmem:[%s890_s1 + $0x90] sm:$0xff]  ;;  %v487_v36 = vld [vmem:[%s890_s1 + $0x98] sm:$0xff]  ;;  %v488_v40 = vld [vmem:[%s890_s1 + $0xa0] sm:$0xff] }
   0xa   :  { %650 = vmatprep.subr.bf16.mxu0 %v692_v0  ;;  %v660_v39 = vpack.c.bf16 %v487_v36, %v486_v35  ;;  %v489_v41 = vld [vmem:[%s890_s1 + $0xa8] sm:$0xff]  ;;  %v490_v45 = vld [vmem:[%s890_s1 + $0xb0] sm:$0xff]  ;;  %v491_v46 = vld [vmem:[%s890_s1 + $0xb8] sm:$0xff] }
   0xb   :  { %v663_v44 = vpack.c.bf16 %v489_v41, %v488_v40  ;;  %v666_v49 = vpack.c.bf16 %v491_v46, %v490_v45 }
   0xc   :  { %640 = vmatpush3.bf16.msra.mxu1 %v639_v20  ;;  %v43_v42 = vld [vmem:[#allocation2 + $0x11] sm:$0xff] }
   0xd   :  { %652 = vmatpush3.bf16.msra.mxu0 %v651_v22  ;;  %641 = vmatprep.subr.bf16.mxu1 %v692_v0  ;;  %v267_v56 = vld [vmem:[#allocation2 + $0x12] sm:$0xff] }
   0xe   :  { %653 = vmatprep.subr.bf16.mxu0 %v692_v0  ;;  %v41_v32 = vld [vmem:[#allocation2 + $0x1] sm:$0xff]  ;;  %v42_v37 = vld [vmem:[#allocation2 + $0x9] sm:$0xff] }
   0xf   :  { %v28_v33 = vld [vmem:[#allocation2] sm:$0xff]  ;;  %v29_v38 = vld [vmem:[#allocation2 + $0x8] sm:$0xff]  ;;  %v30_v43 = vld [vmem:[#allocation2 + $0x10] sm:$0xff] }
  0x10   :  { %643 = vmatpush3.bf16.msra.mxu1 %v642_v28  ;;  %v44_v47 = vld [vmem:[#allocation2 + $0x19] sm:$0xff]  ;;  %v45_v50 = vld [vmem:[#allocation2 + $0x21] sm:$0x3]  ;;  %v266_v55 = vld [vmem:[#allocation2 + $0xa] sm:$0xff] }
  0x11   :  { %655 = vmatpush3.bf16.msra.mxu0 %v654_v29  ;;  %668 = vmatprep.subr.bf16.mxu1 %v692_v0  ;;  %v31_v48 = vld [vmem:[#allocation2 + $0x18] sm:$0xff]  ;;  %v32_v51 = vld [vmem:[#allocation2 + $0x20] sm:$0x3]  ;;  %v265_v53 = vld [vmem:[#allocation2 + $0x2] sm:$0xff] }
  0x12   :  { %656 = vmatprep.subr.bf16.mxu0 %v692_v0  ;;  %v268_v52 = vld [vmem:[#allocation2 + $0x1a] sm:$0xff]  ;;  %v269_v54 = vld [vmem:[#allocation2 + $0x22] sm:$0x3] }
  0x13   :  { %556 = vmatmul.mubr.msk.f32.vlgmr.msra.gmra.mrb[0].mxu1 %vm17_vm2, %v41_v32 }
  0x14   :  { %587 = vmatmul.mubr.msk.f32.vlgmr.msra.gmra.mrb[0].mxu0 %vm17_vm2, %v28_v33  ;;  %558 = vmatprep.mubr.msk.f32.mxu1 %vm693_vm1, %v694_v8 }
  0x15   :  { %658 = vmatpush3.bf16.msra.mxu0 %v657_v34  ;;  %589 = vmatprep.mubr.msk.f32.mxu0 %vm693_vm1, %v694_v8 }
  0x16   :  { %672 = vmatpush3.bf16.msra.mxu1 %v657_v34  ;;  %659 = vmatprep.subr.bf16.mxu0 %v692_v0 }
  0x17   :  { %559 = vmatmul.mubr.msk.f32.gmra.mrb[2].mxu1 %vm17_vm2, %v42_v37  ;;  %669 = vmatprep.subr.bf16.mxu1 %v692_v0 }
  0x18   :  { %590 = vmatmul.mubr.msk.f32.gmra.mrb[2].mxu0 %vm17_vm2, %v29_v38  ;;  %561 = vmatprep.mubr.msk.f32.mxu1 %vm693_vm1, %v694_v8 }
  0x19   :  { %661 = vmatpush3.bf16.msra.mxu0 %v660_v39  ;;  %592 = vmatprep.mubr.msk.f32.mxu0 %vm693_vm1, %v694_v8 }
  0x1a   :  { %673 = vmatpush3.bf16.msra.mxu1 %v660_v39  ;;  %662 = vmatprep.subr.bf16.mxu0 %v692_v0 }
  0x1b   :  { %562 = vmatmul.mubr.msk.f32.gmra.mrb[4].mxu1 %vm17_vm2, %v43_v42  ;;  %670 = vmatprep.subr.bf16.mxu1 %v692_v0 }
  0x1c   :  { %593 = vmatmul.mubr.msk.f32.gmra.mrb[4].mxu0 %vm17_vm2, %v30_v43  ;;  %564 = vmatprep.mubr.msk.f32.mxu1 %vm693_vm1, %v694_v8 }
  0x1d   :  { %595 = vmatprep.mubr.msk.f32.mxu0 %vm693_vm1, %v694_v8  ;;  %664 = vmatpush3.bf16.msra.mxu0 %v663_v44 }
  0x1e   :  { %674 = vmatpush3.bf16.msra.mxu1 %v663_v44  ;;  %665 = vmatprep.subr.bf16.mxu0 %v692_v0 }
  0x1f   :  { %565 = vmatmul.mubr.msk.f32.gmra.mrb[6].mxu1 %vm17_vm2, %v44_v47  ;;  %671 = vmatprep.subr.bf16.mxu1 %v692_v0 }
  0x20   :  { %596 = vmatmul.mubr.msk.f32.gmra.mrb[6].mxu0 %vm17_vm2, %v31_v48  ;;  %567 = vmatprep.mubr.msk.f32.mxu1 %vm693_vm1, %v694_v8 }
  0x21   :  { %598 = vmatprep.mubr.msk.f32.mxu0 %vm693_vm1, %v694_v8  ;;  %667 = vmatpush3.bf16.msra.mxu0 %v666_v49 }
  0x22   :  { %675 = vmatpush3.bf16.msra.mxu1 %v666_v49 }
  0x23   :  { %568 = vmatmul.mubr.msk.f32.gmra.mrb[8].mxu1 %vm17_vm2, %v45_v50 }
  0x24   :  { %599 = vmatmul.mubr.msk.f32.gmra.mrb[8].mxu0 %vm17_vm2, %v32_v51  ;;  %626 = vmatprep.mubr.msk.f32.mxu1 %vm693_vm1, %v694_v8 }
  0x25   :  { %617 = vmatprep.mubr.msk.f32.mxu0 %vm693_vm1, %v694_v8 }
  0x27   :  { %627 = vmatmul.mubr.msk.f32.vlgmr.msra.gmra.mrb[10].mxu1 %vm17_vm2, %v268_v52 }
  0x28   :  { %618 = vmatmul.mubr.msk.f32.vlgmr.msra.gmra.mrb[0].mxu0 %vm17_vm2, %v265_v53  ;;  %629 = vmatprep.mubr.msk.f32.mxu1 %vm693_vm1, %v694_v8 }
  0x29   :  { %620 = vmatprep.mubr.msk.f32.mxu0 %vm693_vm1, %v694_v8 }
  0x2b   :  { %630 = vmatmul.mubr.msk.f32.gmra.mrb[12].mxu1 %vm17_vm2, %v269_v54 }
  0x2c   :  { %621 = vmatmul.mubr.msk.f32.gmra.mrb[2].mxu0 %vm17_vm2, %v266_v55 }
  0x2d   :  { %623 = vmatprep.mubr.msk.f32.mxu0 %vm693_vm1, %v694_v8 }
  0x30   :  { %624 = vmatmul.mubr.msk.f32.gmra.mrb[4].mxu0 %vm17_vm2, %v267_v56 }
  0xe6   :  { %v136_v57 = vpop.f32.mrb[0].mxu1 }
  0xe7   :  { %v557_v58 = vpop.f32.mrb[1].mxu1 }
  0xea   :  { %v141_v59 = vpop.f32.mrb[2].mxu1 }
  0xeb   :  { %v560_v60 = vpop.f32.mrb[3].mxu1 }
  0xee   :  { %v146_v61 = vpop.f32.mrb[4].mxu1 }
  0xef   :  { %v563_v62 = vpop.f32.mrb[5].mxu1 }
  0xf2   :  { %v151_v63 = vpop.f32.mrb[6].mxu1 }
  0xf3   :  { %v256_v0 = vpop.f32.mrb[6].mxu0  ;;  %v566_v1 = vpop.f32.mrb[7].mxu1 }
  0xf4   :  { %v257_v2 = vadd.f32 %v256_v0, %v151_v63  ;;  %v597_v3 = vpop.f32.mrb[7].mxu0 }
  0xf6   :  { %v156_v4 = vpop.f32.mrb[8].mxu1 }
  0xf7   :  { %v261_v5 = vpop.f32.mrb[8].mxu0  ;;  %v569_v6 = vpop.f32.mrb[9].mxu1 }
  0xf8   :  { %v262_v7 = vadd.f32 %v261_v5, %v156_v4  ;;  %v600_v9 = vpop.f32.mrb[9].mxu0 }
  0xfa   :  { %v375_v8 = vpop.f32.mrb[10].mxu1 }
  0xfb   :  { %v360_v10 = vpop.f32.mrb[0].mxu0  ;;  %v387_v11 = vadd.f32 %v375_v8, %v257_v2  ;;  %v628_v12 = vpop.f32.mrb[11].mxu1 }
  0xfc   :  { %v676_v13 = vadd.f32 %v360_v10, %v136_v57  ;;  %v619_v14 = vpop.f32.mrb[1].mxu0 }
  0xfd   :  { %498 = vst [vmem:[%s892_s2 + $0x16] sm:$0xff] %v387_v11  ;;  %v433_v16 = vmul.f32 %v387_v11, %v387_v11  ;;  %v418_v22 = vrot.slane %v387_v11, 2 }
  0xfe   :  { %389 = vst [vmem:[%s892_s2] sm:$0xff] %v676_v13  ;;  %v380_v15 = vpop.f32.mrb[12].mxu1  ;;  %v399_v25 = vmul.f32 %v676_v13, %v676_v13 }
  0xff   :  { %v365_v17 = vpop.f32.mrb[2].mxu0  ;;  %v388_v18 = vadd.f32 %v380_v15, %v262_v7  ;;  %v631_v19 = vpop.f32.mrb[13].mxu1  ;;  %v439_v28 = vrot.slane %v433_v16, 2 }
 0x100   :  { %v677_v20 = vadd.f32 %v365_v17, %v141_v59  ;;  %v622_v21 = vpop.f32.mrb[3].mxu0 }
 0x101   :  { %499 = vst [vmem:[%s892_s2 + $0x1e] sm:$0x3] %v388_v18  ;;  %v420_v23 = vrot.slane %v388_v18, 2  ;;  %v434_v24 = vmul.f32 %v388_v18, %v388_v18 }
 0x102   :  { %390 = vst [vmem:[%s892_s2 + $0x8] sm:$0xff] %v677_v20  ;;  %v391_v26 = vadd.f32 %v677_v20, %v676_v13  ;;  %v400_v27 = vmul.f32 %v677_v20, %v677_v20 }
 0x103   :  { %v421_v29 = vsel %vm416_vm3, %v418_v22, %v420_v23  ;;  %v441_v30 = vrot.slane %v434_v24, 2  ;;  %v370_v31 = vpop.f32.mrb[4].mxu0 }
 0x104   :  { %v392_v32 = vrot.slane %v391_v26, 4  ;;  %v401_v33 = vadd.f32 %v400_v27, %v399_v25  ;;  %v678_v34 = vadd.f32 %v370_v31, %v146_v61  ;;  %v625_v35 = vpop.f32.mrb[5].mxu0 }
 0x105   :  { %v442_v36 = vsel %vm416_vm3, %v439_v28, %v441_v30 }
 0x106   :  { %v393_v37 = vadd.f32 %v392_v32, %v391_v26  ;;  %v402_v38 = vrot.slane %v401_v33, 4  ;;  %497 = vst [vmem:[%s892_s2 + $0xe] sm:$0xfc] %v678_v34  ;;  %v417_v39 = vrot.slane %v678_v34, 2  ;;  %v432_v40 = vmul.f32 %v678_v34, %v678_v34 }
 0x108   :  { %v403_v41 = vadd.f32 %v402_v38, %v401_v33  ;;  %v419_v42 = vsel %vm416_vm3, %v417_v39, %v418_v22  ;;  %v438_v43 = vrot.slane %v432_v40, 2  ;;  %v394_v44 = vrot.slane %v393_v37, 2 }
 0x109   :  { %v424_v45 = vadd.f32 %v421_v29, %v419_v42 }
 0x10a   :  { %v440_v46 = vsel %vm416_vm3, %v438_v43, %v439_v28  ;;  %v404_v47 = vrot.slane %v403_v41, 2  ;;  %v395_v50 = vadd.f32 %v394_v44, %v393_v37 }
 0x10b   :  { %v425_v48 = vrot.slane %v424_v45, 4  ;;  %v445_v49 = vadd.f32 %v442_v36, %v440_v46 }
 0x10c   :  { %v405_v53 = vadd.f32 %v404_v47, %v403_v41  ;;  %v396_v56 = vrot.slane %v395_v50, 1 }
 0x10d   :  { %v426_v51 = vadd.f32 %v425_v48, %v424_v45  ;;  %v446_v52 = vrot.slane %v445_v49, 4 }
 0x10e   :  { %v406_v59 = vrot.slane %v405_v53, 1  ;;  %v397_v62 = vadd.f32 %v396_v56, %v395_v50 }
 0x10f   :  { %v427_v54 = vrot.slane %v426_v51, 2  ;;  %v447_v55 = vadd.f32 %v446_v52, %v445_v49 }
 0x110   :  { %v407_v1 = vadd.f32 %v406_v59, %v405_v53 }
 0x111   :  { %v428_v57 = vadd.f32 %v427_v54, %v426_v51  ;;  %v448_v58 = vrot.slane %v447_v55, 2 }
 0x113   :  { %v429_v60 = vrot.slane %v428_v57, 1  ;;  %v449_v61 = vadd.f32 %v448_v58, %v447_v55 }
 0x115   :  { %v430_v63 = vadd.f32 %v429_v60, %v428_v57  ;;  %v450_v0 = vrot.slane %v449_v61, 1 }
 0x117   :  { %v431_v2 = vadd.f32 %v430_v63, %v397_v62  ;;  %v451_v3 = vadd.f32 %v450_v0, %v449_v61 }
 0x119   :  { %v452_v4 = vadd.f32 %v451_v3, %v407_v1 }
 0x11b   :  { %v454_v5 = vsel %vm453_vm4, %v431_v2, %v452_v4 }
 0x11c   :  { %455 = vst [vmem:[%s893_s3] sm:$0x3] %v454_v5 }

// kernel: conv_block.4
= control target key start
LH: loop header
LB: loop body
LE: loop exit
PB: predicated region body
PF: predicated region fallthrough
CT: control target
= control target key end

     0   :  { %v813_v0 = vmov 0.0|0.0   ;;  %v814_v4 = vmov 0.0   ;;  %vm815_vm0 = vmmov 0   ;;  %vm418_vm1 = vcmask 1045504   ;;  %s1097_s2 = inlined_call_operand.vmem [shape: f32[3,128,128], index: 2, kind: input, shape index: {}]   ;;  %s1098_s1 = inlined_call_operand.vmem [shape: f32[2,128], index: 1, kind: input, shape index: {}]   ;;  %s1099_s0 = inlined_call_operand.vmem [shape: f32[2,16,128], index: 0, kind: input, shape index: {}]   ;;  %s1100_s3 = inlined_call_operand.vmem [shape: f32[2,16,128], index: 3, kind: output, shape index: {0}]   ;;  %s1101_s4 = inlined_call_operand.vmem [shape: f32[1,2,128], index: 4, kind: output, shape index: {1}]  }
   0x1   :  { %709 = vmatprep.subr.bf16.mxu1 %v813_v0  ;;  %733 = vmatprep.subr.bf16.mxu0 %v813_v0  ;;  %v470_v1 = vld [vmem:[%s1097_s2 + $0x80] sm:$0xff]  ;;  %v471_v2 = vld [vmem:[%s1097_s2 + $0x88] sm:$0xff]  ;;  %18 = vst [vmem:[#allocation2] sm:$0x1] %v814_v4  ;;  %37 = vst [vmem:[#allocation2 + $0x11] sm:$0x1] %v814_v4 }
   0x2   :  { %v56_v3 = vld [vmem:[%s1097_s2] sm:$0xff]  ;;  %38 = vst [vmem:[#allocation2 + $0x12] sm:$0x1] %v814_v4  ;;  %50 = vst [vmem:[#allocation2 + $0x23] sm:$0x1] %v814_v4  ;;  %v710_v5 = vpack.c.bf16 %v471_v2, %v470_v1  ;;  %v57_v6 = vld [vmem:[%s1097_s2 + $0x8] sm:$0xff]  ;;  %600 = vmatprep.mubr.msk.f32.mxu1 %vm815_vm0, %v814_v4  ;;  %647 = vmatprep.mubr.msk.f32.mxu0 %vm815_vm0, %v814_v4 }
   0x3   :  { %v472_v7 = vld [vmem:[%s1097_s2 + $0x90] sm:$0xff]  ;;  %v473_v8 = vld [vmem:[%s1097_s2 + $0x98] sm:$0xff]  ;;  %v734_v9 = vpack.c.bf16 %v57_v6, %v56_v3  ;;  %v474_v14 = vld [vmem:[%s1097_s2 + $0xa0] sm:$0xff]  ;;  %vm455_vm2 = vcmask 1040384  }
   0x4   :  { %v58_v10 = vld [vmem:[%s1097_s2 + $0x10] sm:$0xff]  ;;  %v59_v11 = vld [vmem:[%s1097_s2 + $0x18] sm:$0xff]  ;;  %711 = vmatpush3.bf16.msra.mxu1 %v710_v5  ;;  %v713_v12 = vpack.c.bf16 %v473_v8, %v472_v7  ;;  %v475_v15 = vld [vmem:[%s1097_s2 + $0xa8] sm:$0xff] }
   0x5   :  { %735 = vmatpush3.bf16.msra.mxu0 %v734_v9  ;;  %712 = vmatprep.subr.bf16.mxu1 %v813_v0  ;;  %v737_v13 = vpack.c.bf16 %v59_v11, %v58_v10  ;;  %v60_v16 = vld [vmem:[%s1097_s2 + $0x20] sm:$0xff]  ;;  %v61_v17 = vld [vmem:[%s1097_s2 + $0x28] sm:$0xff]  ;;  %v716_v18 = vpack.c.bf16 %v475_v15, %v474_v14  ;;  %v476_v20 = vld [vmem:[%s1097_s2 + $0xb0] sm:$0xff] }
   0x6   :  { %736 = vmatprep.subr.bf16.mxu0 %v813_v0  ;;  %v740_v19 = vpack.c.bf16 %v61_v17, %v60_v16  ;;  %v477_v21 = vld [vmem:[%s1097_s2 + $0xb8] sm:$0xff]  ;;  %v62_v22 = vld [vmem:[%s1097_s2 + $0x30] sm:$0xff]  ;;  %v466_v24 = vld [vmem:[%s1098_s1] ss:$0 sm:$0xff] }
   0x7   :  { %v63_v23 = vld [vmem:[%s1097_s2 + $0x38] sm:$0xff]  ;;  %v719_v25 = vpack.c.bf16 %v477_v21, %v476_v20  ;;  %v467_v26 = vld [vmem:[%s1098_s1 + $0x1] ss:$0 sm:$0xff]  ;;  %v479_v30 = vld [vmem:[%s1097_s2 + $0xc8] sm:$0xff] }
   0x8   :  { %714 = vmatpush3.bf16.msra.mxu1 %v713_v12  ;;  %v19_v27 = vld [vmem:[%s1099_s0] sm:$0xff]  ;;  %v743_v28 = vpack.c.bf16 %v63_v23, %v62_v22  ;;  %v65_v33 = vld [vmem:[%s1097_s2 + $0x48] sm:$0xff]  ;;  %v468_v38 = vld [vmem:[%s1099_s0 + $0x10] sm:$0xff] }
   0x9   :  { %738 = vmatpush3.bf16.msra.mxu0 %v737_v13  ;;  %715 = vmatprep.subr.bf16.mxu1 %v813_v0  ;;  %v478_v29 = vld [vmem:[%s1097_s2 + $0xc0] sm:$0xff]  ;;  %v25_v31 = vmul.f32 %v466_v24, %v19_v27  ;;  %v20_v35 = vld [vmem:[%s1099_s0 + $0x8] sm:$0xff]  ;;  %v480_v40 = vld [vmem:[%s1097_s2 + $0xd0] sm:$0xff]  ;;  %v42_v43 = vmul.f32 %v468_v38, %v466_v24 }
   0xa   :  { %739 = vmatprep.subr.bf16.mxu0 %v813_v0  ;;  %v64_v32 = vld [vmem:[%s1097_s2 + $0x40] sm:$0xff]  ;;  %v722_v36 = vpack.c.bf16 %v479_v30, %v478_v29  ;;  %v26_v37 = vmul.f32 %v466_v24, %v20_v35  ;;  %v481_v41 = vld [vmem:[%s1097_s2 + $0xd8] sm:$0xff]  ;;  %v66_v45 = vld [vmem:[%s1097_s2 + $0x50] sm:$0xff] }
   0xb   :  { %v926_v34 = vadd.f32 %v467_v26, %v25_v31  ;;  %v746_v39 = vpack.c.bf16 %v65_v33, %v64_v32  ;;  %v469_v44 = vld [vmem:[%s1099_s0 + $0x18] sm:$0xff]  ;;  %v44_v49 = vadd.f32 %v467_v26, %v42_v43  ;;  %v725_v50 = vpack.c.bf16 %v481_v41, %v480_v40  ;;  %v482_v54 = vld [vmem:[%s1097_s2 + $0xe0] sm:$0xff]  ;;  %v483_v55 = vld [vmem:[%s1097_s2 + $0xe8] sm:$0xff] }
   0xc   :  { %717 = vmatpush3.bf16.msra.mxu1 %v716_v18  ;;  %v67_v46 = vld [vmem:[%s1097_s2 + $0x58] sm:$0xff]  ;;  %v952_v47 = vadd.f32 %v467_v26, %v26_v37  ;;  %v43_v48 = vmul.f32 %v469_v44, %v466_v24  ;;  %v68_v57 = vld [vmem:[%s1097_s2 + $0x60] sm:$0xff]  ;;  %v69_v58 = vld [vmem:[%s1097_s2 + $0x68] sm:$0xff]  ;;  %v728_v60 = vpack.c.bf16 %v483_v55, %v482_v54 }
   0xd   :  { %741 = vmatpush3.bf16.msra.mxu0 %v740_v19  ;;  %718 = vmatprep.subr.bf16.mxu1 %v813_v0  ;;  %v33_v42 = vmax.f32 %v926_v34, 0.0  ;;  %v749_v53 = vpack.c.bf16 %v67_v46, %v66_v45  ;;  %v46_v56 = vmax.f32 %v44_v49, 0.0  ;;  %v752_v61 = vpack.c.bf16 %v69_v58, %v68_v57  ;;  %v484_v62 = vld [vmem:[%s1097_s2 + $0xf0] sm:$0xff]  ;;  %v485_v63 = vld [vmem:[%s1097_s2 + $0xf8] sm:$0xff]  ;;  %v486_v6 = vld [vmem:[%s1097_s2 + $0x100] sm:$0xff] }
   0xe   :  { %742 = vmatprep.subr.bf16.mxu0 %v813_v0  ;;  %v34_v51 = vmax.f32 %v952_v47, 0.0  ;;  %v45_v52 = vadd.f32 %v467_v26, %v43_v48  ;;  %v70_v1 = vld [vmem:[%s1097_s2 + $0x70] sm:$0xff]  ;;  %v71_v2 = vld [vmem:[%s1097_s2 + $0x78] sm:$0xff]  ;;  %v731_v3 = vpack.c.bf16 %v485_v63, %v484_v62  ;;  %v487_v7 = vld [vmem:[%s1097_s2 + $0x108] sm:$0xff] }
   0xf   :  { %35 = vst [vmem:[#allocation2 + $0x1] sm:$0xff] %v33_v42  ;;  %48 = vst [vmem:[#allocation2 + $0x13] sm:$0xff] %v46_v56  ;;  %v755_v5 = vpack.c.bf16 %v71_v2, %v70_v1  ;;  %v758_v8 = vpack.c.bf16 %v487_v7, %v486_v6  ;;  %v488_v10 = vld [vmem:[%s1097_s2 + $0x110] sm:$0xff]  ;;  %v489_v11 = vld [vmem:[%s1097_s2 + $0x118] sm:$0xff] }
  0x10   :  { %720 = vmatpush3.bf16.msra.mxu1 %v719_v25  ;;  %36 = vst [vmem:[#allocation2 + $0x9] sm:$0xff] %v34_v51  ;;  %v47_v59 = vmax.f32 %v45_v52, 0.0  ;;  %v761_v12 = vpack.c.bf16 %v489_v11, %v488_v10  ;;  %v490_v13 = vld [vmem:[%s1097_s2 + $0x120] sm:$0xff]  ;;  %v491_v14 = vld [vmem:[%s1097_s2 + $0x128] sm:$0xff]  ;;  %v492_v17 = vld [vmem:[%s1097_s2 + $0x130] sm:$0xff] }
  0x11   :  { %744 = vmatpush3.bf16.msra.mxu0 %v743_v28  ;;  %721 = vmatprep.subr.bf16.mxu1 %v813_v0  ;;  %v764_v16 = vpack.c.bf16 %v491_v14, %v490_v13  ;;  %v493_v18 = vld [vmem:[%s1097_s2 + $0x138] sm:$0xff]  ;;  %v494_v22 = vld [vmem:[%s1097_s2 + $0x140] sm:$0xff]  ;;  %v495_v23 = vld [vmem:[%s1097_s2 + $0x148] sm:$0xff] }
  0x12   :  { %745 = vmatprep.subr.bf16.mxu0 %v813_v0  ;;  %49 = vst [vmem:[#allocation2 + $0x1b] sm:$0xff] %v47_v59  ;;  %v767_v21 = vpack.c.bf16 %v493_v18, %v492_v17  ;;  %v770_v26 = vpack.c.bf16 %v495_v23, %v494_v22  ;;  %v496_v27 = vld [vmem:[%s1097_s2 + $0x150] sm:$0xff]  ;;  %v497_v28 = vld [vmem:[%s1097_s2 + $0x158] sm:$0xff]  ;;  %v498_v32 = vld [vmem:[%s1097_s2 + $0x160] sm:$0xff] }
  0x13   :  { %v773_v31 = vpack.c.bf16 %v497_v28, %v496_v27  ;;  %v499_v33 = vld [vmem:[%s1097_s2 + $0x168] sm:$0xff]  ;;  %v500_v35 = vld [vmem:[%s1097_s2 + $0x170] sm:$0xff] }
  0x14   :  { %723 = vmatpush3.bf16.msra.mxu1 %v722_v36  ;;  %v776_v34 = vpack.c.bf16 %v499_v33, %v498_v32  ;;  %v501_v36 = vld [vmem:[%s1097_s2 + $0x178] sm:$0xff] }
  0x15   :  { %747 = vmatpush3.bf16.msra.mxu0 %v746_v39  ;;  %724 = vmatprep.subr.bf16.mxu1 %v813_v0  ;;  %v779_v37 = vpack.c.bf16 %v501_v36, %v500_v35 }
  0x16   :  { %748 = vmatprep.subr.bf16.mxu0 %v813_v0  ;;  %v51_v9 = vld [vmem:[#allocation2] sm:$0xff]  ;;  %v74_v20 = vld [vmem:[#allocation2 + $0x11] sm:$0xff] }
  0x17   :  { %v52_v15 = vld [vmem:[#allocation2 + $0x8] sm:$0xff]  ;;  %v53_v19 = vld [vmem:[#allocation2 + $0x10] sm:$0xff] }
  0x18   :  { %726 = vmatpush3.bf16.msra.mxu1 %v725_v50  ;;  %v274_v39 = vld [vmem:[#allocation2 + $0x2] sm:$0xff]  ;;  %v275_v41 = vld [vmem:[#allocation2 + $0xa] sm:$0xff] }
  0x19   :  { %750 = vmatpush3.bf16.msra.mxu0 %v749_v53  ;;  %727 = vmatprep.subr.bf16.mxu1 %v813_v0  ;;  %v54_v24 = vld [vmem:[#allocation2 + $0x18] sm:$0xff]  ;;  %v55_v29 = vld [vmem:[#allocation2 + $0x20] sm:$0x3]  ;;  %v278_v40 = vld [vmem:[#allocation2 + $0x22] sm:$0x3] }
  0x1a   :  { %751 = vmatprep.subr.bf16.mxu0 %v813_v0  ;;  %v75_v25 = vld [vmem:[#allocation2 + $0x19] sm:$0xff]  ;;  %v76_v30 = vld [vmem:[#allocation2 + $0x21] sm:$0x3] }
  0x1b   :  { %v277_v38 = vld [vmem:[#allocation2 + $0x1a] sm:$0xff] }
  0x1c   :  { %729 = vmatpush3.bf16.msra.mxu1 %v728_v60 }
  0x1d   :  { %753 = vmatpush3.bf16.msra.mxu0 %v752_v61  ;;  %730 = vmatprep.subr.bf16.mxu1 %v813_v0 }
  0x1e   :  { %754 = vmatprep.subr.bf16.mxu0 %v813_v0 }
  0x20   :  { %732 = vmatpush3.bf16.msra.mxu1 %v731_v3 }
  0x21   :  { %756 = vmatpush3.bf16.msra.mxu0 %v755_v5  ;;  %781 = vmatprep.subr.bf16.mxu1 %v813_v0 }
  0x22   :  { %757 = vmatprep.subr.bf16.mxu0 %v813_v0 }
  0x23   :  { %601 = vmatmul.mubr.f32.vlgmr.msra.gmra.mrb[0].mxu1 %v33_v42 }
  0x24   :  { %648 = vmatmul.mubr.f32.vlgmr.msra.gmra.mrb[0].mxu0 %v51_v9  ;;  %789 = vmatpush3.bf16.msra.mxu1 %v758_v8 }
  0x25   :  { %759 = vmatpush3.bf16.msra.mxu0 %v758_v8  ;;  %782 = vmatprep.subr.bf16.mxu1 %v813_v0 }
  0x26   :  { %760 = vmatprep.subr.bf16.mxu0 %v813_v0  ;;  %650 = vmatprep.mubr.msk.f32.mxu0 %vm815_vm0, %v814_v4 }
  0x27   :  { %603 = vmatprep.mubr.msk.f32.mxu1 %vm815_vm0, %v814_v4 }
  0x28   :  { %790 = vmatpush3.bf16.msra.mxu1 %v761_v12  ;;  %651 = vmatmul.mubr.f32.gmra.mrb[2].mxu0 %v52_v15 }
  0x29   :  { %762 = vmatpush3.bf16.msra.mxu0 %v761_v12  ;;  %783 = vmatprep.subr.bf16.mxu1 %v813_v0 }
  0x2a   :  { %763 = vmatprep.subr.bf16.mxu0 %v813_v0  ;;  %604 = vmatmul.mubr.f32.gmra.mrb[2].mxu1 %v34_v51 }
  0x2b   :  { %653 = vmatprep.mubr.msk.f32.mxu0 %vm815_vm0, %v814_v4  ;;  %606 = vmatprep.mubr.msk.f32.mxu1 %vm815_vm0, %v814_v4 }
  0x2c   :  { %791 = vmatpush3.bf16.msra.mxu1 %v764_v16  ;;  %654 = vmatmul.mubr.f32.gmra.mrb[4].mxu0 %v53_v19 }
  0x2d   :  { %765 = vmatpush3.bf16.msra.mxu0 %v764_v16  ;;  %784 = vmatprep.subr.bf16.mxu1 %v813_v0 }
  0x2e   :  { %766 = vmatprep.subr.bf16.mxu0 %v813_v0  ;;  %607 = vmatmul.mubr.f32.gmra.mrb[4].mxu1 %v74_v20 }
  0x2f   :  { %656 = vmatprep.mubr.msk.f32.mxu0 %vm815_vm0, %v814_v4  ;;  %609 = vmatprep.mubr.msk.f32.mxu1 %vm815_vm0, %v814_v4 }
  0x30   :  { %792 = vmatpush3.bf16.msra.mxu1 %v767_v21  ;;  %657 = vmatmul.mubr.f32.gmra.mrb[6].mxu0 %v54_v24 }
  0x31   :  { %768 = vmatpush3.bf16.msra.mxu0 %v767_v21  ;;  %785 = vmatprep.subr.bf16.mxu1 %v813_v0 }
  0x32   :  { %769 = vmatprep.subr.bf16.mxu0 %v813_v0  ;;  %610 = vmatmul.mubr.f32.gmra.mrb[6].mxu1 %v75_v25 }
  0x33   :  { %659 = vmatprep.mubr.msk.f32.mxu0 %vm815_vm0, %v814_v4  ;;  %612 = vmatprep.mubr.msk.f32.mxu1 %vm815_vm0, %v814_v4 }
  0x34   :  { %793 = vmatpush3.bf16.msra.mxu1 %v770_v26  ;;  %660 = vmatmul.mubr.f32.gmra.mrb[8].mxu0 %v55_v29 }
  0x35   :  { %771 = vmatpush3.bf16.msra.mxu0 %v770_v26  ;;  %786 = vmatprep.subr.bf16.mxu1 %v813_v0 }
  0x36   :  { %772 = vmatprep.subr.bf16.mxu0 %v813_v0  ;;  %613 = vmatmul.mubr.f32.gmra.mrb[8].mxu1 %v76_v30 }
  0x37   :  { %694 = vmatprep.mubr.msk.f32.mxu0 %vm815_vm0, %v814_v4  ;;  %703 = vmatprep.mubr.msk.f32.mxu1 %vm815_vm0, %v814_v4 }
  0x38   :  { %794 = vmatpush3.bf16.msra.mxu1 %v773_v31 }
  0x39   :  { %774 = vmatpush3.bf16.msra.mxu0 %v773_v31  ;;  %787 = vmatprep.subr.bf16.mxu1 %v813_v0 }
  0x3a   :  { %775 = vmatprep.subr.bf16.mxu0 %v813_v0 }
  0x3c   :  { %795 = vmatpush3.bf16.msra.mxu1 %v776_v34 }
  0x3d   :  { %777 = vmatpush3.bf16.msra.mxu0 %v776_v34  ;;  %788 = vmatprep.subr.bf16.mxu1 %v813_v0 }
  0x3e   :  { %778 = vmatprep.subr.bf16.mxu0 %v813_v0  ;;  %v276_v0 = vld [vmem:[#allocation2 + $0x12] sm:$0xff] }
  0x40   :  { %796 = vmatpush3.bf16.msra.mxu1 %v779_v37 }
  0x41   :  { %780 = vmatpush3.bf16.msra.mxu0 %v779_v37 }
  0x43   :  { %704 = vmatmul.mubr.f32.vlgmr.msra.gmra.mrb[10].mxu1 %v277_v38 }
  0x44   :  { %695 = vmatmul.mubr.f32.vlgmr.msra.gmra.mrb[0].mxu0 %v274_v39  ;;  %706 = vmatprep.mubr.msk.f32.mxu1 %vm815_vm0, %v814_v4 }
  0x45   :  { %697 = vmatprep.mubr.msk.f32.mxu0 %vm815_vm0, %v814_v4 }
  0x47   :  { %707 = vmatmul.mubr.f32.gmra.mrb[12].mxu1 %v278_v40 }
  0x48   :  { %698 = vmatmul.mubr.f32.gmra.mrb[2].mxu0 %v275_v41 }
  0x49   :  { %700 = vmatprep.mubr.msk.f32.mxu0 %vm815_vm0, %v814_v4 }
  0x4c   :  { %701 = vmatmul.mubr.f32.gmra.mrb[4].mxu0 %v276_v0 }
  0xf6   :  { %v160_v42 = vpop.f32.mrb[0].mxu1 }
  0xf7   :  { %v602_v43 = vpop.f32.mrb[1].mxu1 }
  0xfd   :  { %v165_v44 = vpop.f32.mrb[2].mxu1 }
  0xfe   :  { %v605_v45 = vpop.f32.mrb[3].mxu1 }
 0x101   :  { %v170_v46 = vpop.f32.mrb[4].mxu1 }
 0x102   :  { %v608_v47 = vpop.f32.mrb[5].mxu1 }
 0x103   :  { %v265_v48 = vpop.f32.mrb[6].mxu0 }
 0x104   :  { %v658_v49 = vpop.f32.mrb[7].mxu0 }
 0x105   :  { %v175_v50 = vpop.f32.mrb[6].mxu1 }
 0x106   :  { %v266_v51 = vadd.f32 %v265_v48, %v175_v50  ;;  %v611_v52 = vpop.f32.mrb[7].mxu1 }
 0x107   :  { %v270_v53 = vpop.f32.mrb[8].mxu0 }
 0x108   :  { %v661_v54 = vpop.f32.mrb[9].mxu0 }
 0x109   :  { %v180_v55 = vpop.f32.mrb[8].mxu1 }
 0x10a   :  { %v271_v56 = vadd.f32 %v270_v53, %v180_v55  ;;  %v614_v57 = vpop.f32.mrb[9].mxu1 }
 0x116   :  { %v377_v58 = vpop.f32.mrb[10].mxu1 }
 0x117   :  { %v362_v4 = vpop.f32.mrb[0].mxu0  ;;  %v389_v59 = vadd.f32 %v377_v58, %v266_v51  ;;  %v705_v60 = vpop.f32.mrb[11].mxu1 }
 0x118   :  { %v797_v61 = vadd.f32 %v362_v4, %v160_v42  ;;  %v696_v62 = vpop.f32.mrb[1].mxu0 }
 0x119   :  { %503 = vst [vmem:[%s1100_s3 + $0x16] sm:$0xff] %v389_v59  ;;  %v435_v1 = vmul.f32 %v389_v59, %v389_v59  ;;  %v420_v8 = vrot.slane %v389_v59, 2 }
 0x11a   :  { %391 = vst [vmem:[%s1100_s3] sm:$0xff] %v797_v61  ;;  %v382_v63 = vpop.f32.mrb[12].mxu1  ;;  %v401_v11 = vmul.f32 %v797_v61, %v797_v61 }
 0x11b   :  { %v367_v2 = vpop.f32.mrb[2].mxu0  ;;  %v390_v3 = vadd.f32 %v382_v63, %v271_v56  ;;  %v708_v5 = vpop.f32.mrb[13].mxu1  ;;  %v441_v14 = vrot.slane %v435_v1, 2 }
 0x11c   :  { %v798_v6 = vadd.f32 %v367_v2, %v165_v44  ;;  %v699_v7 = vpop.f32.mrb[3].mxu0 }
 0x11d   :  { %504 = vst [vmem:[%s1100_s3 + $0x1e] sm:$0x3] %v390_v3  ;;  %v422_v9 = vrot.slane %v390_v3, 2  ;;  %v436_v10 = vmul.f32 %v390_v3, %v390_v3 }
 0x11e   :  { %392 = vst [vmem:[%s1100_s3 + $0x8] sm:$0xff] %v798_v6  ;;  %v393_v12 = vadd.f32 %v798_v6, %v797_v61  ;;  %v402_v13 = vmul.f32 %v798_v6, %v798_v6 }
 0x11f   :  { %v423_v15 = vsel %vm418_vm1, %v420_v8, %v422_v9  ;;  %v443_v16 = vrot.slane %v436_v10, 2  ;;  %v372_v17 = vpop.f32.mrb[4].mxu0 }
 0x120   :  { %v394_v18 = vrot.slane %v393_v12, 4  ;;  %v403_v19 = vadd.f32 %v402_v13, %v401_v11  ;;  %v799_v20 = vadd.f32 %v372_v17, %v170_v46  ;;  %v702_v21 = vpop.f32.mrb[5].mxu0 }
 0x121   :  { %v444_v22 = vsel %vm418_vm1, %v441_v14, %v443_v16 }
 0x122   :  { %v395_v23 = vadd.f32 %v394_v18, %v393_v12  ;;  %v404_v24 = vrot.slane %v403_v19, 4  ;;  %502 = vst [vmem:[%s1100_s3 + $0xe] sm:$0xfc] %v799_v20  ;;  %v419_v25 = vrot.slane %v799_v20, 2  ;;  %v434_v26 = vmul.f32 %v799_v20, %v799_v20 }
 0x124   :  { %v405_v27 = vadd.f32 %v404_v24, %v403_v19  ;;  %v421_v28 = vsel %vm418_vm1, %v419_v25, %v420_v8  ;;  %v440_v29 = vrot.slane %v434_v26, 2  ;;  %v396_v30 = vrot.slane %v395_v23, 2 }
 0x125   :  { %v426_v31 = vadd.f32 %v423_v15, %v421_v28 }
 0x126   :  { %v442_v32 = vsel %vm418_vm1, %v440_v29, %v441_v14  ;;  %v406_v33 = vrot.slane %v405_v27, 2  ;;  %v397_v36 = vadd.f32 %v396_v30, %v395_v23 }
 0x127   :  { %v427_v34 = vrot.slane %v426_v31, 4  ;;  %v447_v35 = vadd.f32 %v444_v22, %v442_v32 }
 0x128   :  { %v407_v39 = vadd.f32 %v406_v33, %v405_v27  ;;  %v398_v0 = vrot.slane %v397_v36, 1 }
 0x129   :  { %v428_v37 = vadd.f32 %v427_v34, %v426_v31  ;;  %v448_v38 = vrot.slane %v447_v35, 4 }
 0x12a   :  { %v408_v44 = vrot.slane %v407_v39, 1  ;;  %v399_v47 = vadd.f32 %v398_v0, %v397_v36 }
 0x12b   :  { %v429_v40 = vrot.slane %v428_v37, 2  ;;  %v449_v41 = vadd.f32 %v448_v38, %v447_v35 }
 0x12c   :  { %v409_v50 = vadd.f32 %v408_v44, %v407_v39 }
 0x12d   :  { %v430_v42 = vadd.f32 %v429_v40, %v428_v37  ;;  %v450_v43 = vrot.slane %v449_v41, 2 }
 0x12f   :  { %v431_v45 = vrot.slane %v430_v42, 1  ;;  %v451_v46 = vadd.f32 %v450_v43, %v449_v41 }
 0x131   :  { %v432_v48 = vadd.f32 %v431_v45, %v430_v42  ;;  %v452_v49 = vrot.slane %v451_v46, 1 }
 0x133   :  { %v433_v51 = vadd.f32 %v432_v48, %v399_v47  ;;  %v453_v52 = vadd.f32 %v452_v49, %v451_v46 }
 0x135   :  { %v454_v53 = vadd.f32 %v453_v52, %v409_v50 }
 0x137   :  { %v456_v54 = vsel %vm455_vm2, %v433_v51, %v454_v53 }
 0x138   :  { %457 = vst [vmem:[%s1101_s4] sm:$0x3] %v456_v54 }

// kernel: conv_block.5
= control target key start
LH: loop header
LB: loop body
LE: loop exit
PB: predicated region body
PF: predicated region fallthrough
CT: control target
= control target key end

     0   :  { %v491_v19 = vmov 1983009808   ;;  %v38_v21 = vlaneseq  ;;  %vm233_vm0 = vcmask 1041409   ;;  %vm235_vm1 = vcmask 1042434   ;;  %s722_s2 = inlined_call_operand.vmem [shape: f32[256,128], index: 2, kind: input, shape index: {}]   ;;  %s723_s0 = inlined_call_operand.vmem [shape: f32[2,16,128], index: 0, kind: input, shape index: {}]   ;;  %s724_s1 = inlined_call_operand.vmem [shape: f32[2,128], index: 1, kind: input, shape index: {}]   ;;  %s725_s3 = inlined_call_operand.vmem [shape: f32[1,8,128], index: 3, kind: output, shape index: {}]  }
   0x1   :  { %v312_v0 = vld [vmem:[%s722_s2 + $0x80] sm:$0xff]  ;;  %v313_v1 = vld [vmem:[%s722_s2 + $0x88] sm:$0xff]  ;;  %v314_v5 = vld [vmem:[%s722_s2 + $0x90] sm:$0xff]  ;;  %v36_v20 = vunpack.c.l.s4 %v491_v19  ;;  %vm237_vm2 = vcmask 1043459   ;;  %vm239_vm3 = vcmask 1044484   ;;  %vm241_vm4 = vcmask 1045509  }
   0x2   :  { %v296_v2 = vld [vmem:[%s722_s2] sm:$0xff]  ;;  %v458_v3 = vpack.c.bf16 %v313_v1, %v312_v0  ;;  %v297_v4 = vld [vmem:[%s722_s2 + $0x8] sm:$0xff]  ;;  %v315_v6 = vld [vmem:[%s722_s2 + $0x98] sm:$0xff]  ;;  %v39_v36 = vshrl.u32 %v38_v21, 7  ;;  %vm243_vm5 = vcmask 1046534   ;;  %vm245_vm6 = vcmask 1047559  }
   0x3   :  { %v460_v7 = vpack.c.bf16 %v297_v4, %v296_v2  ;;  %v462_v8 = vpack.c.bf16 %v315_v6, %v314_v5  ;;  %v298_v9 = vld [vmem:[%s722_s2 + $0x10] sm:$0xff]  ;;  %v299_v10 = vld [vmem:[%s722_s2 + $0x18] sm:$0xff]  ;;  %v316_v11 = vld [vmem:[%s722_s2 + $0xa0] sm:$0xff]  ;;  %v37_v35 = vunpack.c.0.s8 %v36_v20 }
   0x4   :  { %459 = vmatprep.subr.bf16.mxu0 %v458_v3  ;;  %v317_v12 = vld [vmem:[%s722_s2 + $0xa8] sm:$0xff]  ;;  %v464_v13 = vpack.c.bf16 %v299_v10, %v298_v9  ;;  %v300_v15 = vld [vmem:[%s722_s2 + $0x20] sm:$0xff]  ;;  %v318_v17 = vld [vmem:[%s722_s2 + $0xb0] sm:$0xff]  ;;  %v635_v52 = vsub.s32 0, %v39_v36 }
   0x5   :  { %461 = vmatpush3.bf16.msra.mxu0 %v460_v7  ;;  %v466_v14 = vpack.c.bf16 %v317_v12, %v316_v11  ;;  %v301_v16 = vld [vmem:[%s722_s2 + $0x28] sm:$0xff]  ;;  %v319_v18 = vld [vmem:[%s722_s2 + $0xb8] sm:$0xff]  ;;  %v302_v23 = vld [vmem:[%s722_s2 + $0x30] sm:$0xff]  ;;  %v652_v59 = vsub.s32 %v37_v35, %v39_v36 }
   0x6   :  { %463 = vmatprep.subr.bf16.mxu0 %v462_v8  ;;  %v468_v22 = vpack.c.bf16 %v301_v16, %v300_v15  ;;  %v303_v24 = vld [vmem:[%s722_s2 + $0x38] sm:$0xff]  ;;  %v320_v25 = vld [vmem:[%s722_s2 + $0xc0] sm:$0xff]  ;;  %v470_v26 = vpack.c.bf16 %v319_v18, %v318_v17  ;;  %v321_v27 = vld [vmem:[%s722_s2 + $0xc8] sm:$0xff] }
   0x7   :  { %v304_v28 = vld [vmem:[%s722_s2 + $0x40] sm:$0xff]  ;;  %v305_v29 = vld [vmem:[%s722_s2 + $0x48] sm:$0xff]  ;;  %v575_v30 = vld [vmem:[%s722_s2 + $0xd0] sm:$0xff]  ;;  %v472_v41 = vpack.c.bf16 %v303_v24, %v302_v23  ;;  %v474_v47 = vpack.c.bf16 %v321_v27, %v320_v25 }
   0x8   :  { %v580_v31 = vld [vmem:[%s722_s2 + $0xd8] sm:$0xff]  ;;  %v585_v32 = vld [vmem:[%s722_s2 + $0x50] sm:$0xff]  ;;  %v14_v34 = vld [vmem:[%s723_s0] sm:$0xff]  ;;  %v476_v54 = vpack.c.bf16 %v305_v29, %v304_v28 }
   0x9   :  { %465 = vmatpush3.bf16.msra.mxu0 %v464_v13  ;;  %v590_v33 = vld [vmem:[%s722_s2 + $0x58] sm:$0xff]  ;;  %v598_v37 = vld [vmem:[%s722_s2 + $0xe0] sm:$0xff]  ;;  %v413_v40 = vld [vmem:[%s723_s0 + $0x10] sm:$0xff]  ;;  %v478_v61 = vpack.c.bf16 %v580_v31, %v575_v30 }
   0xa   :  { %467 = vmatprep.subr.bf16.mxu0 %v466_v14  ;;  %v403_v38 = vld [vmem:[%s724_s1] ss:$0 sm:$0xff]  ;;  %v404_v39 = vld [vmem:[%s724_s1 + $0x1] ss:$0 sm:$0xff]  ;;  %v612_v42 = vld [vmem:[%s722_s2 + $0xe8] sm:$0xff]  ;;  %v480_v62 = vpack.c.bf16 %v590_v33, %v585_v32 }
   0xb   :  { %v21_v43 = vmul.f32 %v403_v38, %v14_v34  ;;  %v414_v44 = vld [vmem:[%s723_s0 + $0x18] sm:$0xff]  ;;  %v111_v45 = vmul.f32 %v413_v40, %v403_v38  ;;  %v15_v46 = vld [vmem:[%s723_s0 + $0x8] sm:$0xff]  ;;  %v623_v48 = vld [vmem:[%s722_s2 + $0x60] sm:$0xff]  ;;  %v482_v1 = vpack.c.bf16 %v612_v42, %v598_v37 }
   0xc   :  { %v628_v49 = vld [vmem:[%s722_s2 + $0x68] sm:$0xff]  ;;  %v633_v50 = vld [vmem:[%s722_s2 + $0xf0] sm:$0xff]  ;;  %v112_v51 = vmul.f32 %v414_v44, %v403_v38  ;;  %v22_v53 = vmul.f32 %v403_v38, %v15_v46  ;;  %v640_v55 = vld [vmem:[%s722_s2 + $0xf8] sm:$0xff] }
   0xd   :  { %469 = vmatpush3.bf16.msra.mxu0 %v468_v22  ;;  %v645_v56 = vld [vmem:[%s722_s2 + $0x70] sm:$0xff]  ;;  %v650_v57 = vld [vmem:[%s722_s2 + $0x78] sm:$0xff]  ;;  %v28_v58 = vadd.f32 %v404_v39, %v21_v43  ;;  %v113_v60 = vadd.f32 %v404_v39, %v111_v45  ;;  %v484_v2 = vpack.c.bf16 %v628_v49, %v623_v48  ;;  %v486_v5 = vpack.c.bf16 %v640_v55, %v633_v50 }
   0xe   :  { %471 = vmatprep.subr.bf16.mxu0 %v470_v26  ;;  %v114_v63 = vadd.f32 %v404_v39, %v112_v51  ;;  %v29_v0 = vadd.f32 %v404_v39, %v22_v53  ;;  %v488_v6 = vpack.c.bf16 %v650_v57, %v645_v56 }
   0xf   :  { %v30_v3 = vmax.f32 %v28_v58, 0.0  ;;  %v115_v4 = vmax.f32 %v113_v60, 0.0 }
  0x10   :  { %v116_v7 = vmax.f32 %v114_v63, 0.0  ;;  %v31_v8 = vmax.f32 %v29_v0, 0.0 }
  0x11   :  { %473 = vmatpush3.bf16.msra.mxu0 %v472_v41  ;;  %v119_v9 = vcombine.high %v115_v4, %v115_v4  ;;  %v126_v10 = vrot.slane %v115_v4, %v652_v59  ;;  %v34_v11 = vcombine.high %v30_v3, %v30_v3  ;;  %v668_v12 = vrot.slane %v30_v3, %v652_v59 }
  0x12   :  { %475 = vmatprep.subr.bf16.mxu0 %v474_v47  ;;  %v136_v13 = vcombine.high %v116_v7, %v116_v7  ;;  %v143_v14 = vrot.slane %v116_v7, %v652_v59  ;;  %v51_v15 = vcombine.high %v31_v8, %v31_v8  ;;  %v672_v16 = vrot.slane %v31_v8, %v652_v59 }
  0x13   :  { %v133_v17 = vrot.slane %v119_v9, %v652_v59  ;;  %v134_v18 = vcombine.high %v126_v10, %v126_v10  ;;  %v415_v19 = vrot.slane %v126_v10, 9  ;;  %v48_v20 = vrot.slane %v34_v11, %v652_v59 }
  0x14   :  { %v150_v21 = vrot.slane %v136_v13, %v652_v59  ;;  %v151_v22 = vcombine.high %v143_v14, %v143_v14  ;;  %v419_v23 = vrot.slane %v143_v14, 9  ;;  %v49_v24 = vcombine.high %v668_v12, %v668_v12 }
  0x15   :  { %477 = vmatpush3.bf16.msra.mxu0 %v476_v54  ;;  %v135_v25 = vcombine.high %v133_v17, %v133_v17  ;;  %v416_v26 = vrot.slane %v134_v18, 9  ;;  %v417_v27 = vrot.slane %v133_v17, 9  ;;  %v185_v28 = vadd.f32 %v415_v19, %v126_v10 }
  0x16   :  { %479 = vmatprep.subr.bf16.mxu0 %v478_v61  ;;  %v152_v29 = vcombine.high %v150_v21, %v150_v21  ;;  %v420_v30 = vrot.slane %v151_v22, 9  ;;  %v421_v31 = vrot.slane %v150_v21, 9  ;;  %v189_v32 = vadd.f32 %v419_v23, %v143_v14 }
  0x17   :  { %v418_v33 = vrot.slane %v135_v25, 9  ;;  %v186_v34 = vadd.f32 %v416_v26, %v134_v18  ;;  %v187_v35 = vadd.f32 %v417_v27, %v133_v17  ;;  %v259_v36 = vrot.slane %v185_v28, %v635_v52 }
  0x18   :  { %v422_v37 = vrot.slane %v152_v29, 9  ;;  %v190_v38 = vadd.f32 %v420_v30, %v151_v22  ;;  %v191_v39 = vadd.f32 %v421_v31, %v150_v21  ;;  %v275_v40 = vrot.slane %v189_v32, %v635_v52 }
  0x19   :  { %481 = vmatpush3.bf16.msra.mxu0 %v480_v62  ;;  %v188_v41 = vadd.f32 %v418_v33, %v135_v25  ;;  %v263_v42 = vrot.slane %v186_v34, %v635_v52  ;;  %v267_v43 = vrot.slane %v187_v35, %v635_v52  ;;  %v50_v44 = vcombine.high %v48_v20, %v48_v20 }
  0x1a   :  { %483 = vmatprep.subr.bf16.mxu0 %v482_v1  ;;  %v192_v45 = vadd.f32 %v422_v37, %v152_v29  ;;  %v279_v46 = vrot.slane %v190_v38, %v635_v52  ;;  %v283_v47 = vrot.slane %v191_v39, %v635_v52  ;;  %v65_v48 = vrot.slane %v51_v15, %v652_v59 }
  0x1b   :  { %v271_v49 = vrot.slane %v188_v41, %v635_v52  ;;  %v288_v50 = vsel %vm233_vm0, %v263_v42, %v259_v36  ;;  %v66_v51 = vcombine.high %v672_v16, %v672_v16  ;;  %v405_v53 = vrot.slane %v668_v12, 9 }
  0x1c   :  { %v287_v54 = vrot.slane %v192_v45, %v635_v52  ;;  %v289_v55 = vsel %vm235_vm1, %v267_v43, %v288_v50  ;;  %v67_v58 = vcombine.high %v65_v48, %v65_v48  ;;  %v406_v60 = vrot.slane %v49_v24, 9 }
  0x1d   :  { %485 = vmatpush3.bf16.msra.mxu0 %v484_v2  ;;  %v290_v61 = vsel %vm237_vm2, %v271_v49, %v289_v55  ;;  %v407_v59 = vrot.slane %v48_v20, 9  ;;  %v408_v62 = vrot.slane %v50_v44, 9  ;;  %v409_v63 = vrot.slane %v672_v16, 9 }
  0x1e   :  { %487 = vmatprep.subr.bf16.mxu0 %v486_v5  ;;  %v291_v0 = vsel %vm239_vm3, %v275_v40, %v290_v61  ;;  %v410_v1 = vrot.slane %v66_v51, 9  ;;  %v411_v2 = vrot.slane %v65_v48, 9  ;;  %v412_v3 = vrot.slane %v67_v58, 9 }
  0x1f   :  { %v292_v4 = vsel %vm241_vm4, %v279_v46, %v291_v0  ;;  %v100_v5 = vadd.f32 %v405_v53, %v668_v12  ;;  %v101_v7 = vadd.f32 %v406_v60, %v49_v24  ;;  %v102_v8 = vadd.f32 %v407_v59, %v48_v20 }
  0x20   :  { %v293_v9 = vsel %vm243_vm5, %v283_v47, %v292_v4  ;;  %v103_v10 = vadd.f32 %v408_v62, %v50_v44  ;;  %v104_v11 = vadd.f32 %v409_v63, %v672_v16  ;;  %v105_v13 = vadd.f32 %v410_v1, %v66_v51 }
  0x21   :  { %489 = vmatpush3.bf16.msra.mxu0 %v488_v6  ;;  %v294_v14 = vsel %vm245_vm6, %v287_v54, %v293_v9  ;;  %v106_v15 = vadd.f32 %v411_v2, %v65_v48  ;;  %v204_v17 = vrot.slane %v100_v5, %v635_v52  ;;  %v107_v56 = vadd.f32 %v412_v3, %v67_v58 }
  0x22   :  { %392 = vmatprep.mubr.f32.mxu0 %v294_v14  ;;  %v208_v57 = vrot.slane %v101_v7, %v635_v52  ;;  %v212_v6 = vrot.slane %v102_v8, %v635_v52  ;;  %v216_v12 = vrot.slane %v103_v10, %v635_v52  ;;  %v220_v18 = vrot.slane %v104_v11, %v635_v52 }
  0x23   :  { %v224_v19 = vrot.slane %v105_v13, %v635_v52  ;;  %v228_v20 = vrot.slane %v106_v15, %v635_v52  ;;  %v232_v22 = vrot.slane %v107_v56, %v635_v52 }
  0x24   :  { %v234_v16 = vsel %vm233_vm0, %v208_v57, %v204_v17 }
  0x25   :  { %v236_v21 = vsel %vm235_vm1, %v212_v6, %v234_v16 }
  0x26   :  { %v238_v23 = vsel %vm237_vm2, %v216_v12, %v236_v21 }
  0x27   :  { %v240_v24 = vsel %vm239_vm3, %v220_v18, %v238_v23 }
  0x28   :  { %v242_v25 = vsel %vm241_vm4, %v224_v19, %v240_v24 }
  0x29   :  { %v244_v26 = vsel %vm243_vm5, %v228_v20, %v242_v25 }
  0x2a   :  { %v246_v27 = vsel %vm245_vm6, %v232_v22, %v244_v26 }
  0x2b   :  { %393 = vmatmul.mubr.f32.vlgmr.msra.gmra.mrb[0].mxu0 %v246_v27 }
  0xfe   :  { %v455_v28 = vpop.f32.mrb[0].mxu0 }
  0xff   :  { %v456_v29 = vpop.f32.mrb[1].mxu0 }
 0x100   :  { %v457_v30 = vadd.f32 %v456_v29, %v455_v28 }
 0x102   :  { %398 = vst [vmem:[%s725_s3] sm:$0xff] %v457_v30 }

</bundles_post_ra>
